<compile_context>
chip_gen: v7x
topology: tpu7x:2x2x1
jax: 0.10.0
libtpu: 0.0.40
codegen_flags: <defaults>
</compile_context>

<pallas_src>
import math

import jax
import jax.numpy as jnp
from jax.experimental import pallas as pl
from jax.experimental.pallas import tpu as pltpu

# num_classes = [fine ... coarse]; feature_size == num_classes[0] (asserted in __init__)
NUM_CLASSES = (20, 16, 12, 8, 4)
FEATURE_SIZE = NUM_CLASSES[0]
FEATURE_DIFF = FEATURE_SIZE // 5
HIDDEN = 128                       # synthetic backbone width (lane-dense)
# classifier_1..classifier_5 output dims: num_classes[4], [3], [2], [1], [0]
HEAD_OUT_DIMS = (NUM_CLASSES[4], NUM_CLASSES[3], NUM_CLASSES[2],
                 NUM_CLASSES[1], NUM_CLASSES[0])                 # (4, 8, 12, 16, 20)
HEAD_COL_OFFS = tuple(int(sum(HEAD_OUT_DIMS[:k])) for k in range(5))  # (0, 4, 12, 24, 40)
LOGIT_SLAB = 128                   # lane-dense packed logits width (60 used)


# ----------------------------- fused Pallas kernel ---------------------------


def _make_fused_kernel(batch_tile):
    def kernel(xcol_ref, pool_ref, convw_ref, convb_ref, fusedw_ref, fusedb_ref,
               tgt_ref, logits_ref, loss_ref):
        # ---------- synthetic backbone: im2col conv (bf16 in, f32 acc) ----------
        hmap = jnp.dot(xcol_ref[...], convw_ref[...],
                       preferred_element_type=jnp.float32)         # (BT*P, HIDDEN)
        hmap = jnp.maximum(hmap + convb_ref[...], 0.0)

        # Global average pool over P pixels per image as ONE matmul against the
        # precomputed (BT, BT*P) selector (already scaled by 1/(H*W)).
        pooled = jnp.dot(pool_ref[...], hmap,
                         preferred_element_type=jnp.float32)       # (BT, HIDDEN)

        # ---------- fused projection + 5 classifier heads (one matmul) ----------
        logits = jnp.dot(pooled, fusedw_ref[...],
                         preferred_element_type=jnp.float32) + fusedb_ref[...]
        logits_ref[...] = logits                                    # (BT, 128)

        # ---------- per-level cross-entropy (sum over this tile's rows) ----------
        tgts = tgt_ref[...]                                         # (BT, 8) int32
        lane = jax.lax.broadcasted_iota(jnp.int32, (batch_tile, LOGIT_SLAB), 1)
        loss_lane = jax.lax.broadcasted_iota(jnp.int32, (1, LOGIT_SLAB), 1)
        loss_row = jnp.zeros((1, LOGIT_SLAB), jnp.float32)
        for lvl in range(5):
            off = HEAD_COL_OFFS[lvl]
            ncls = HEAD_OUT_DIMS[lvl]
            in_level = (lane >= off) & (lane < off + ncls)
            z = jnp.where(in_level, logits, -1e30)
            zmax = jnp.max(z, axis=-1, keepdims=True)               # (BT, 1)
            ez = jnp.where(in_level, jnp.exp(z - zmax), 0.0)
            lse = zmax + jnp.log(jnp.sum(ez, axis=-1, keepdims=True))
            tcol = tgts[:, lvl:lvl + 1]                             # (BT, 1)
            tlogit = jnp.sum(jnp.where(lane == off + tcol, logits, 0.0),
                             axis=-1, keepdims=True)                # (BT, 1)
            nll_sum = jnp.sum(lse - tlogit, axis=0, keepdims=True)  # (1, 1)
            loss_row = loss_row + jnp.where(loss_lane == lvl, nll_sum, 0.0)
        loss_ref[0] = loss_row                                      # (1, 128)

    return kernel


# ------------------------------ JAX glue -------------------------------------


def get_targets(targets):
    # TODO(synk): get_targets() is an external hierarchy-lookup helper in the
    # original repo; use a deterministic coarse grouping of fine labels here.
    n0, n1, n2, n3, n4 = NUM_CLASSES
    l1 = (targets * n4) // n0   # classifier_1 level (num_classes[4])
    l2 = (targets * n3) // n0   # classifier_2 level (num_classes[3])
    l3 = (targets * n2) // n0   # classifier_3 level (num_classes[2])
    l4 = (targets * n1) // n0   # classifier_4 level (num_classes[1])
    return l1, l2, l3, l4


def accuracy_top1(logits, targets):
    pred = jnp.argmax(logits, axis=-1)
    return jnp.mean((pred == targets).astype(jnp.float32)) * 100.0


def init_params(key, in_channels):
    keys = jax.random.split(key, 14)

    def uniform(k, shape, bound):
        return jax.random.uniform(k, shape, jnp.float32, -bound, bound)

    kkc = 9 * in_channels
    params = {
        # conv weight stored flattened tap-major/channel-minor: row = tap*C + ch
        "conv_w": uniform(keys[0], (kkc, HIDDEN), math.sqrt(2.0 / kkc)),
        "conv_b": jnp.zeros((1, HIDDEN), jnp.float32),
        "proj_w": uniform(keys[1], (HIDDEN, FEATURE_SIZE), 1.0 / math.sqrt(HIDDEN)),
        "proj_b": uniform(keys[2], (1, FEATURE_SIZE), 1.0 / math.sqrt(HIDDEN)),
    }
    # Pack the 5 nn.Linear heads into one zero-padded (FEATURE_SIZE, 128) weight.
    # Zero rows [0, k*fd) implement the forward-equivalent suffix slice
    # torch.cat([x_k, x_{k+1}.detach(), ...], 1); columns beyond 60 stay zero.
    head_w = jnp.zeros((FEATURE_SIZE, LOGIT_SLAB), jnp.float32)
    head_b = jnp.zeros((1, LOGIT_SLAB), jnp.float32)
    for k in range(5):
        din = FEATURE_SIZE - k * FEATURE_DIFF
        dout = HEAD_OUT_DIMS[k]
        bound = 1.0 / math.sqrt(din)          # PyTorch nn.Linear default init range
        wk = uniform(keys[3 + 2 * k], (din, dout), bound)
        bk = uniform(keys[4 + 2 * k], (1, dout), bound)
        off = HEAD_COL_OFFS[k]
        head_w = head_w.at[k * FEATURE_DIFF:, off:off + dout].set(wk)
        head_b = head_b.at[:, off:off + dout].set(bk)
    params["head_w"] = head_w
    params["head_b"] = head_b
    return params


def _pick_batch_tile(n):
    # Prefer sublane-friendly multiples of 8 with >=2 tiles (feeds both v7x
    # TensorCores); amortize per-step overhead with larger tiles when possible.
    for bt in (64, 32, 16, 8):
        if n % bt == 0 and n // bt >= 2:
            return bt
    return n


def forward(params, x_nchw, targets):
    n, c, h, w = x_nchw.shape
    p = h * w
    k_dim = 9 * c

    # Host-side im2col for the 3x3 SAME conv: (N*P, 9*C), lane-dense bf16.
    x_nhwc = jnp.transpose(x_nchw, (0, 2, 3, 1)).astype(jnp.float32)
    xp = jnp.pad(x_nhwc, ((0, 0), (1, 1), (1, 1), (0, 0)))          # (N, H+2, W+2, C)
    cols = [xp[:, dy:dy + h, dx:dx + w, :] for dy in range(3) for dx in range(3)]
    x_col = jnp.concatenate(cols, axis=-1).reshape(n * p, k_dim).astype(jnp.bfloat16)

    # Batch tiling.
    batch_tile = _pick_batch_tile(n)
    assert n % batch_tile == 0
    num_tiles = n // batch_tile

    # Pooling selector (BT, BT*P): 1/(H*W) where the column belongs to row b.
    pr = jax.lax.broadcasted_iota(jnp.int32, (batch_tile, batch_tile * p), 0)
    pc = jax.lax.broadcasted_iota(jnp.int32, (batch_tile, batch_tile * p), 1)
    pool = jnp.where(pc // p == pr, 1.0 / float(p), 0.0).astype(jnp.float32)

    # Fuse projection + packed head (both affine; exact up to fp32 rounding).
    fused_w = params["proj_w"] @ params["head_w"]                    # (HIDDEN, 128)
    fused_b = params["proj_b"] @ params["head_w"] + params["head_b"]  # (1, 128)
    conv_w = params["conv_w"].astype(jnp.bfloat16)                   # (9*C, HIDDEN)

    # Per-level integer targets packed into one small int32 array (cols 0..4).
    l1t, l2t, l3t, l4t = get_targets(targets)
    tgt = jnp.stack([l1t, l2t, l3t, l4t, targets], axis=1).astype(jnp.int32)
    tgt = jnp.pad(tgt, ((0, 0), (0, 3)))                             # (N, 8)

    kernel = _make_fused_kernel(batch_tile)

    cost = pl.CostEstimate(
        flops=2 * n * p * k_dim * HIDDEN
              + 2 * n * p * HIDDEN
              + 2 * n * HIDDEN * LOGIT_SLAB,
        transcendentals=6 * n * LOGIT_SLAB,
        bytes_accessed=x_col.size * 2 + n * LOGIT_SLAB * 4 + num_tiles * LOGIT_SLAB * 4,
    )

    logits_slab, loss_slab = pl.pallas_call(
        kernel,
        out_shape=(
            jax.ShapeDtypeStruct((n, LOGIT_SLAB), jnp.float32),
            jax.ShapeDtypeStruct((num_tiles, 1, LOGIT_SLAB), jnp.float32),
        ),
        grid_spec=pltpu.PrefetchScalarGridSpec(
            num_scalar_prefetch=0,
            grid=(num_tiles,),
            in_specs=[
                pl.BlockSpec((batch_tile * p, k_dim), lambda i: (i, 0)),
                pl.BlockSpec((batch_tile, batch_tile * p), lambda i: (0, 0)),
                pl.BlockSpec((k_dim, HIDDEN), lambda i: (0, 0)),
                pl.BlockSpec((1, HIDDEN), lambda i: (0, 0)),
                pl.BlockSpec((HIDDEN, LOGIT_SLAB), lambda i: (0, 0)),
                pl.BlockSpec((1, LOGIT_SLAB), lambda i: (0, 0)),
                pl.BlockSpec((batch_tile, 8), lambda i: (i, 0)),
            ],
            out_specs=[
                pl.BlockSpec((batch_tile, LOGIT_SLAB), lambda i: (i, 0)),
                pl.BlockSpec((1, 1, LOGIT_SLAB), lambda i: (i, 0, 0)),
            ],
        ),
        compiler_params=pltpu.CompilerParams(dimension_semantics=("parallel",)),
        cost_estimate=cost,
    )(x_col, pool, conv_w, params["conv_b"], fused_w, fused_b, tgt)

    # Unpack the lane-dense logits slab and finish the CE means (sum / N).
    outs = []
    for lvl in range(5):
        off, ncls = HEAD_COL_OFFS[lvl], HEAD_OUT_DIMS[lvl]
        outs.append(logits_slab[:, off:off + ncls])
    l1_out, l2_out, l3_out, l4_out, l5_out = outs

    ce = jnp.sum(loss_slab[:, 0, :5], axis=0) / n                    # (5,) per-level means
    ce1, ce2, ce3, ce4, ce5 = ce[0], ce[1], ce[2], ce[3], ce[4]
    total_loss = jnp.sum(ce)
    aux = {
        "loss": total_loss,
        "ce_loss_list": [ce5, ce4, ce3, ce2, ce1],
        "acc_list": [accuracy_top1(l1_out, l1t), accuracy_top1(l2_out, l2t),
                     accuracy_top1(l3_out, l3t), accuracy_top1(l4_out, l4t),
                     accuracy_top1(l5_out, targets)],
    }
    return l5_out, aux


if __name__ == "__main__":
    key = jax.random.PRNGKey(0)
    pkey, xkey, tkey = jax.random.split(key, 3)

    N, C, H, W = 2, 3, 16, 16
    params = init_params(pkey, C)
    x = jax.random.normal(xkey, (N, C, H, W), dtype=jnp.float32)   # NCHW, like PyTorch
    targets = jax.random.randint(tkey, (N,), 0, NUM_CLASSES[0])

    l5_out, aux = forward(params, x, targets)
    jax.block_until_ready(l5_out)
    jax.block_until_ready(aux["loss"])

    assert l5_out.shape == (N, NUM_CLASSES[0])
    assert bool(jnp.isfinite(aux["loss"]))
    for a in aux["acc_list"]:
        assert bool(jnp.isfinite(a))
    print("KERNEL_OK")
</pallas_src>

<mosaic_0001>
module attributes {stable_mosaic.version = 11 : i64} {
  func.func @kernel(%arg0: i32, %arg1: memref<512x27xbf16, #tpu.memory_space<vmem>>, %arg2: memref<2x512xf32, #tpu.memory_space<vmem>>, %arg3: memref<27x128xbf16, #tpu.memory_space<vmem>>, %arg4: memref<1x128xf32, #tpu.memory_space<vmem>>, %arg5: memref<128x128xf32, #tpu.memory_space<vmem>>, %arg6: memref<1x128xf32, #tpu.memory_space<vmem>>, %arg7: memref<2x8xi32, #tpu.memory_space<vmem>>, %arg8: memref<2x128xf32, #tpu.memory_space<vmem>>, %arg9: memref<1x1x128xf32, #tpu.memory_space<vmem>>) attributes {dimension_semantics = [#tpu.dimension_semantics<parallel>], iteration_bounds = array<i64: 1>, scalar_prefetch = 0 : i64, scratch_operands = 0 : i64, tpu.core_type = #tpu.core_type<tc>, window_params = [{transform_indices = @transform_0, window_bounds = array<i64: 512, 27>}, {pipeline_mode = #tpu.pipeline_mode<synchronous>, transform_indices = @transform_1, window_bounds = array<i64: 2, 512>}, {pipeline_mode = #tpu.pipeline_mode<synchronous>, transform_indices = @transform_2, window_bounds = array<i64: 27, 128>}, {pipeline_mode = #tpu.pipeline_mode<synchronous>, transform_indices = @transform_3, window_bounds = array<i64: 1, 128>}, {pipeline_mode = #tpu.pipeline_mode<synchronous>, transform_indices = @transform_4, window_bounds = array<i64: 128, 128>}, {pipeline_mode = #tpu.pipeline_mode<synchronous>, transform_indices = @transform_5, window_bounds = array<i64: 1, 128>}, {transform_indices = @transform_6, window_bounds = array<i64: 2, 8>}, {transform_indices = @transform_7, window_bounds = array<i64: 2, 128>}, {transform_indices = @transform_8, window_bounds = array<i64: 1, 1, 128>}]} {
    %c0 = arith.constant 0 : index
    %c0_0 = arith.constant 0 : index
    %0 = vector.load %arg1[%c0, %c0_0] : memref<512x27xbf16, #tpu.memory_space<vmem>>, vector<512x27xbf16>
    %c0_1 = arith.constant 0 : index
    %c0_2 = arith.constant 0 : index
    %1 = vector.load %arg3[%c0_1, %c0_2] : memref<27x128xbf16, #tpu.memory_space<vmem>>, vector<27x128xbf16>
    %cst = arith.constant dense<0.000000e+00> : vector<512x128xf32>
    %2 = tpu.matmul %0, %1, %cst {dimension_numbers = #tpu.dot_dimension_numbers<[1], [0], [0], [1], [0, 0, 1, 1], [], []>} : vector<512x27xbf16>, vector<27x128xbf16>, vector<512x128xf32> -> vector<512x128xf32>
    %c0_3 = arith.constant 0 : index
    %c0_4 = arith.constant 0 : index
    %3 = vector.load %arg4[%c0_3, %c0_4] : memref<1x128xf32, #tpu.memory_space<vmem>>, vector<1x128xf32>
    %4 = vector.broadcast %3 : vector<1x128xf32> to vector<512x128xf32>
    %5 = arith.addf %2, %4 : vector<512x128xf32>
    %cst_5 = arith.constant 0.000000e+00 : f32
    %6 = vector.broadcast %cst_5 : f32 to vector<512x128xf32>
    %7 = arith.maximumf %5, %6 : vector<512x128xf32>
    %c0_6 = arith.constant 0 : index
    %c0_7 = arith.constant 0 : index
    %8 = vector.load %arg2[%c0_6, %c0_7] : memref<2x512xf32, #tpu.memory_space<vmem>>, vector<2x512xf32>
    %cst_8 = arith.constant dense<0.000000e+00> : vector<2x128xf32>
    %9 = tpu.matmul %8, %7, %cst_8 {dimension_numbers = #tpu.dot_dimension_numbers<[1], [0], [0], [1], [0, 0, 1, 1], [], []>} : vector<2x512xf32>, vector<512x128xf32>, vector<2x128xf32> -> vector<2x128xf32>
    %c0_9 = arith.constant 0 : index
    %c0_10 = arith.constant 0 : index
    %10 = vector.load %arg5[%c0_9, %c0_10] : memref<128x128xf32, #tpu.memory_space<vmem>>, vector<128x128xf32>
    %cst_11 = arith.constant dense<0.000000e+00> : vector<2x128xf32>
    %11 = tpu.matmul %9, %10, %cst_11 {dimension_numbers = #tpu.dot_dimension_numbers<[1], [0], [0], [1], [0, 0, 1, 1], [], []>} : vector<2x128xf32>, vector<128x128xf32>, vector<2x128xf32> -> vector<2x128xf32>
    %c0_12 = arith.constant 0 : index
    %c0_13 = arith.constant 0 : index
    %12 = vector.load %arg6[%c0_12, %c0_13] : memref<1x128xf32, #tpu.memory_space<vmem>>, vector<1x128xf32>
    %13 = vector.broadcast %12 : vector<1x128xf32> to vector<2x128xf32>
    %14 = arith.addf %11, %13 : vector<2x128xf32>
    %c0_14 = arith.constant 0 : index
    %c0_15 = arith.constant 0 : index
    %15 = vector.load %arg8[%c0_14, %c0_15] : memref<2x128xf32, #tpu.memory_space<vmem>>, vector<2x128xf32>
    tpu.vector_store %arg8[%c0_14, %c0_15], %14 {strides = array<i32>} : memref<2x128xf32, #tpu.memory_space<vmem>>, vector<2x128xf32>,
    %c0_16 = arith.constant 0 : index
    %c0_17 = arith.constant 0 : index
    %16 = vector.load %arg7[%c0_16, %c0_17] : memref<2x8xi32, #tpu.memory_space<vmem>>, vector<2x8xi32>
    %17 = tpu.iota {dimensions = array<i32: 1>} : vector<2x128xi32>
    %18 = tpu.iota {dimensions = array<i32: 1>} : vector<1x128xi32>
    %cst_18 = arith.constant 0.000000e+00 : f32
    %19 = vector.broadcast %cst_18 : f32 to vector<1x128xf32>
    %c0_i32 = arith.constant 0 : i32
    %20 = vector.broadcast %c0_i32 : i32 to vector<2x128xi32>
    %21 = arith.cmpi sge, %17, %20 : vector<2x128xi32>
    %c4_i32 = arith.constant 4 : i32
    %22 = vector.broadcast %c4_i32 : i32 to vector<2x128xi32>
    %23 = arith.cmpi slt, %17, %22 : vector<2x128xi32>
    %24 = arith.andi %21, %23 : vector<2x128xi1>
    %cst_19 = arith.constant -1.000000e+30 : f32
    %25 = vector.broadcast %cst_19 : f32 to vector<2x128xf32>
    %26 = arith.select %24, %14, %25 : vector<2x128xi1>, vector<2x128xf32>
    %cst_20 = arith.constant dense<0xFF800000> : vector<2xf32>
    %27 = vector.multi_reduction <maximumf>, %26, %cst_20 [1] : vector<2x128xf32> to vector<2xf32>
    %28 = vector.shape_cast %27 : vector<2xf32> to vector<2x1xf32>
    %29 = vector.broadcast %28 : vector<2x1xf32> to vector<2x128xf32>
    %30 = arith.subf %26, %29 : vector<2x128xf32>
    %31 = math.exp %30 : vector<2x128xf32>
    %cst_21 = arith.constant 0.000000e+00 : f32
    %32 = vector.broadcast %cst_21 : f32 to vector<2x128xf32>
    %33 = arith.select %24, %31, %32 : vector<2x128xi1>, vector<2x128xf32>
    %cst_22 = arith.constant dense<0.000000e+00> : vector<2xf32>
    %34 = vector.multi_reduction <add>, %33, %cst_22 [1] : vector<2x128xf32> to vector<2xf32>
    %35 = vector.shape_cast %34 : vector<2xf32> to vector<2x1xf32>
    %36 = math.log %35 : vector<2x1xf32>
    %37 = arith.addf %28, %36 : vector<2x1xf32>
    %38 = vector.extract_strided_slice %16 {offsets = [0, 0], sizes = [2, 1], strides = [1, 1]} : vector<2x8xi32> to vector<2x1xi32>
    %c0_i32_23 = arith.constant 0 : i32
    %39 = vector.broadcast %c0_i32_23 : i32 to vector<2x1xi32>
    %40 = arith.addi %39, %38 : vector<2x1xi32>
    %41 = vector.broadcast %40 : vector<2x1xi32> to vector<2x128xi32>
    %42 = arith.cmpi eq, %17, %41 : vector<2x128xi32>
    %cst_24 = arith.constant 0.000000e+00 : f32
    %43 = vector.broadcast %cst_24 : f32 to vector<2x128xf32>
    %44 = arith.select %42, %14, %43 : vector<2x128xi1>, vector<2x128xf32>
    %cst_25 = arith.constant dense<0.000000e+00> : vector<2xf32>
    %45 = vector.multi_reduction <add>, %44, %cst_25 [1] : vector<2x128xf32> to vector<2xf32>
    %46 = vector.shape_cast %45 : vector<2xf32> to vector<2x1xf32>
    %47 = arith.subf %37, %46 : vector<2x1xf32>
    %cst_26 = arith.constant dense<0.000000e+00> : vector<1xf32>
    %48 = vector.multi_reduction <add>, %47, %cst_26 [0] : vector<2x1xf32> to vector<1xf32>
    %49 = vector.shape_cast %48 : vector<1xf32> to vector<1x1xf32>
    %c0_i32_27 = arith.constant 0 : i32
    %50 = vector.broadcast %c0_i32_27 : i32 to vector<1x128xi32>
    %51 = arith.cmpi eq, %18, %50 : vector<1x128xi32>
    %cst_28 = arith.constant 0.000000e+00 : f32
    %52 = vector.shape_cast %49 : vector<1x1xf32> to vector<1x1xf32>
    %53 = vector.broadcast %52 : vector<1x1xf32> to vector<1x128xf32>
    %54 = vector.broadcast %cst_28 : f32 to vector<1x128xf32>
    %55 = arith.select %51, %53, %54 : vector<1x128xi1>, vector<1x128xf32>
    %56 = arith.addf %19, %55 : vector<1x128xf32>
    %c4_i32_29 = arith.constant 4 : i32
    %57 = vector.broadcast %c4_i32_29 : i32 to vector<2x128xi32>
    %58 = arith.cmpi sge, %17, %57 : vector<2x128xi32>
    %c12_i32 = arith.constant 12 : i32
    %59 = vector.broadcast %c12_i32 : i32 to vector<2x128xi32>
    %60 = arith.cmpi slt, %17, %59 : vector<2x128xi32>
    %61 = arith.andi %58, %60 : vector<2x128xi1>
    %cst_30 = arith.constant -1.000000e+30 : f32
    %62 = vector.broadcast %cst_30 : f32 to vector<2x128xf32>
    %63 = arith.select %61, %14, %62 : vector<2x128xi1>, vector<2x128xf32>
    %cst_31 = arith.constant dense<0xFF800000> : vector<2xf32>
    %64 = vector.multi_reduction <maximumf>, %63, %cst_31 [1] : vector<2x128xf32> to vector<2xf32>
    %65 = vector.shape_cast %64 : vector<2xf32> to vector<2x1xf32>
    %66 = vector.broadcast %65 : vector<2x1xf32> to vector<2x128xf32>
    %67 = arith.subf %63, %66 : vector<2x128xf32>
    %68 = math.exp %67 : vector<2x128xf32>
    %cst_32 = arith.constant 0.000000e+00 : f32
    %69 = vector.broadcast %cst_32 : f32 to vector<2x128xf32>
    %70 = arith.select %61, %68, %69 : vector<2x128xi1>, vector<2x128xf32>
    %cst_33 = arith.constant dense<0.000000e+00> : vector<2xf32>
    %71 = vector.multi_reduction <add>, %70, %cst_33 [1] : vector<2x128xf32> to vector<2xf32>
    %72 = vector.shape_cast %71 : vector<2xf32> to vector<2x1xf32>
    %73 = math.log %72 : vector<2x1xf32>
    %74 = arith.addf %65, %73 : vector<2x1xf32>
    %75 = vector.extract_strided_slice %16 {offsets = [0, 1], sizes = [2, 1], strides = [1, 1]} : vector<2x8xi32> to vector<2x1xi32>
    %c4_i32_34 = arith.constant 4 : i32
    %76 = vector.broadcast %c4_i32_34 : i32 to vector<2x1xi32>
    %77 = arith.addi %76, %75 : vector<2x1xi32>
    %78 = vector.broadcast %77 : vector<2x1xi32> to vector<2x128xi32>
    %79 = arith.cmpi eq, %17, %78 : vector<2x128xi32>
    %cst_35 = arith.constant 0.000000e+00 : f32
    %80 = vector.broadcast %cst_35 : f32 to vector<2x128xf32>
    %81 = arith.select %79, %14, %80 : vector<2x128xi1>, vector<2x128xf32>
    %cst_36 = arith.constant dense<0.000000e+00> : vector<2xf32>
    %82 = vector.multi_reduction <add>, %81, %cst_36 [1] : vector<2x128xf32> to vector<2xf32>
    %83 = vector.shape_cast %82 : vector<2xf32> to vector<2x1xf32>
    %84 = arith.subf %74, %83 : vector<2x1xf32>
    %cst_37 = arith.constant dense<0.000000e+00> : vector<1xf32>
    %85 = vector.multi_reduction <add>, %84, %cst_37 [0] : vector<2x1xf32> to vector<1xf32>
    %86 = vector.shape_cast %85 : vector<1xf32> to vector<1x1xf32>
    %c1_i32 = arith.constant 1 : i32
    %87 = vector.broadcast %c1_i32 : i32 to vector<1x128xi32>
    %88 = arith.cmpi eq, %18, %87 : vector<1x128xi32>
    %cst_38 = arith.constant 0.000000e+00 : f32
    %89 = vector.shape_cast %86 : vector<1x1xf32> to vector<1x1xf32>
    %90 = vector.broadcast %89 : vector<1x1xf32> to vector<1x128xf32>
    %91 = vector.broadcast %cst_38 : f32 to vector<1x128xf32>
    %92 = arith.select %88, %90, %91 : vector<1x128xi1>, vector<1x128xf32>
    %93 = arith.addf %56, %92 : vector<1x128xf32>
    %c12_i32_39 = arith.constant 12 : i32
    %94 = vector.broadcast %c12_i32_39 : i32 to vector<2x128xi32>
    %95 = arith.cmpi sge, %17, %94 : vector<2x128xi32>
    %c24_i32 = arith.constant 24 : i32
    %96 = vector.broadcast %c24_i32 : i32 to vector<2x128xi32>
    %97 = arith.cmpi slt, %17, %96 : vector<2x128xi32>
    %98 = arith.andi %95, %97 : vector<2x128xi1>
    %cst_40 = arith.constant -1.000000e+30 : f32
    %99 = vector.broadcast %cst_40 : f32 to vector<2x128xf32>
    %100 = arith.select %98, %14, %99 : vector<2x128xi1>, vector<2x128xf32>
    %cst_41 = arith.constant dense<0xFF800000> : vector<2xf32>
    %101 = vector.multi_reduction <maximumf>, %100, %cst_41 [1] : vector<2x128xf32> to vector<2xf32>
    %102 = vector.shape_cast %101 : vector<2xf32> to vector<2x1xf32>
    %103 = vector.broadcast %102 : vector<2x1xf32> to vector<2x128xf32>
    %104 = arith.subf %100, %103 : vector<2x128xf32>
    %105 = math.exp %104 : vector<2x128xf32>
    %cst_42 = arith.constant 0.000000e+00 : f32
    %106 = vector.broadcast %cst_42 : f32 to vector<2x128xf32>
    %107 = arith.select %98, %105, %106 : vector<2x128xi1>, vector<2x128xf32>
    %cst_43 = arith.constant dense<0.000000e+00> : vector<2xf32>
    %108 = vector.multi_reduction <add>, %107, %cst_43 [1] : vector<2x128xf32> to vector<2xf32>
    %109 = vector.shape_cast %108 : vector<2xf32> to vector<2x1xf32>
    %110 = math.log %109 : vector<2x1xf32>
    %111 = arith.addf %102, %110 : vector<2x1xf32>
    %112 = vector.extract_strided_slice %16 {offsets = [0, 2], sizes = [2, 1], strides = [1, 1]} : vector<2x8xi32> to vector<2x1xi32>
    %c12_i32_44 = arith.constant 12 : i32
    %113 = vector.broadcast %c12_i32_44 : i32 to vector<2x1xi32>
    %114 = arith.addi %113, %112 : vector<2x1xi32>
    %115 = vector.broadcast %114 : vector<2x1xi32> to vector<2x128xi32>
    %116 = arith.cmpi eq, %17, %115 : vector<2x128xi32>
    %cst_45 = arith.constant 0.000000e+00 : f32
    %117 = vector.broadcast %cst_45 : f32 to vector<2x128xf32>
    %118 = arith.select %116, %14, %117 : vector<2x128xi1>, vector<2x128xf32>
    %cst_46 = arith.constant dense<0.000000e+00> : vector<2xf32>
    %119 = vector.multi_reduction <add>, %118, %cst_46 [1] : vector<2x128xf32> to vector<2xf32>
    %120 = vector.shape_cast %119 : vector<2xf32> to vector<2x1xf32>
    %121 = arith.subf %111, %120 : vector<2x1xf32>
    %cst_47 = arith.constant dense<0.000000e+00> : vector<1xf32>
    %122 = vector.multi_reduction <add>, %121, %cst_47 [0] : vector<2x1xf32> to vector<1xf32>
    %123 = vector.shape_cast %122 : vector<1xf32> to vector<1x1xf32>
    %c2_i32 = arith.constant 2 : i32
    %124 = vector.broadcast %c2_i32 : i32 to vector<1x128xi32>
    %125 = arith.cmpi eq, %18, %124 : vector<1x128xi32>
    %cst_48 = arith.constant 0.000000e+00 : f32
    %126 = vector.shape_cast %123 : vector<1x1xf32> to vector<1x1xf32>
    %127 = vector.broadcast %126 : vector<1x1xf32> to vector<1x128xf32>
    %128 = vector.broadcast %cst_48 : f32 to vector<1x128xf32>
    %129 = arith.select %125, %127, %128 : vector<1x128xi1>, vector<1x128xf32>
    %130 = arith.addf %93, %129 : vector<1x128xf32>
    %c24_i32_49 = arith.constant 24 : i32
    %131 = vector.broadcast %c24_i32_49 : i32 to vector<2x128xi32>
    %132 = arith.cmpi sge, %17, %131 : vector<2x128xi32>
    %c40_i32 = arith.constant 40 : i32
    %133 = vector.broadcast %c40_i32 : i32 to vector<2x128xi32>
    %134 = arith.cmpi slt, %17, %133 : vector<2x128xi32>
    %135 = arith.andi %132, %134 : vector<2x128xi1>
    %cst_50 = arith.constant -1.000000e+30 : f32
    %136 = vector.broadcast %cst_50 : f32 to vector<2x128xf32>
    %137 = arith.select %135, %14, %136 : vector<2x128xi1>, vector<2x128xf32>
    %cst_51 = arith.constant dense<0xFF800000> : vector<2xf32>
    %138 = vector.multi_reduction <maximumf>, %137, %cst_51 [1] : vector<2x128xf32> to vector<2xf32>
    %139 = vector.shape_cast %138 : vector<2xf32> to vector<2x1xf32>
    %140 = vector.broadcast %139 : vector<2x1xf32> to vector<2x128xf32>
    %141 = arith.subf %137, %140 : vector<2x128xf32>
    %142 = math.exp %141 : vector<2x128xf32>
    %cst_52 = arith.constant 0.000000e+00 : f32
    %143 = vector.broadcast %cst_52 : f32 to vector<2x128xf32>
    %144 = arith.select %135, %142, %143 : vector<2x128xi1>, vector<2x128xf32>
    %cst_53 = arith.constant dense<0.000000e+00> : vector<2xf32>
    %145 = vector.multi_reduction <add>, %144, %cst_53 [1] : vector<2x128xf32> to vector<2xf32>
    %146 = vector.shape_cast %145 : vector<2xf32> to vector<2x1xf32>
    %147 = math.log %146 : vector<2x1xf32>
    %148 = arith.addf %139, %147 : vector<2x1xf32>
    %149 = vector.extract_strided_slice %16 {offsets = [0, 3], sizes = [2, 1], strides = [1, 1]} : vector<2x8xi32> to vector<2x1xi32>
    %c24_i32_54 = arith.constant 24 : i32
    %150 = vector.broadcast %c24_i32_54 : i32 to vector<2x1xi32>
    %151 = arith.addi %150, %149 : vector<2x1xi32>
    %152 = vector.broadcast %151 : vector<2x1xi32> to vector<2x128xi32>
    %153 = arith.cmpi eq, %17, %152 : vector<2x128xi32>
    %cst_55 = arith.constant 0.000000e+00 : f32
    %154 = vector.broadcast %cst_55 : f32 to vector<2x128xf32>
    %155 = arith.select %153, %14, %154 : vector<2x128xi1>, vector<2x128xf32>
    %cst_56 = arith.constant dense<0.000000e+00> : vector<2xf32>
    %156 = vector.multi_reduction <add>, %155, %cst_56 [1] : vector<2x128xf32> to vector<2xf32>
    %157 = vector.shape_cast %156 : vector<2xf32> to vector<2x1xf32>
    %158 = arith.subf %148, %157 : vector<2x1xf32>
    %cst_57 = arith.constant dense<0.000000e+00> : vector<1xf32>
    %159 = vector.multi_reduction <add>, %158, %cst_57 [0] : vector<2x1xf32> to vector<1xf32>
    %160 = vector.shape_cast %159 : vector<1xf32> to vector<1x1xf32>
    %c3_i32 = arith.constant 3 : i32
    %161 = vector.broadcast %c3_i32 : i32 to vector<1x128xi32>
    %162 = arith.cmpi eq, %18, %161 : vector<1x128xi32>
    %cst_58 = arith.constant 0.000000e+00 : f32
    %163 = vector.shape_cast %160 : vector<1x1xf32> to vector<1x1xf32>
    %164 = vector.broadcast %163 : vector<1x1xf32> to vector<1x128xf32>
    %165 = vector.broadcast %cst_58 : f32 to vector<1x128xf32>
    %166 = arith.select %162, %164, %165 : vector<1x128xi1>, vector<1x128xf32>
    %167 = arith.addf %130, %166 : vector<1x128xf32>
    %c40_i32_59 = arith.constant 40 : i32
    %168 = vector.broadcast %c40_i32_59 : i32 to vector<2x128xi32>
    %169 = arith.cmpi sge, %17, %168 : vector<2x128xi32>
    %c60_i32 = arith.constant 60 : i32
    %170 = vector.broadcast %c60_i32 : i32 to vector<2x128xi32>
    %171 = arith.cmpi slt, %17, %170 : vector<2x128xi32>
    %172 = arith.andi %169, %171 : vector<2x128xi1>
    %cst_60 = arith.constant -1.000000e+30 : f32
    %173 = vector.broadcast %cst_60 : f32 to vector<2x128xf32>
    %174 = arith.select %172, %14, %173 : vector<2x128xi1>, vector<2x128xf32>
    %cst_61 = arith.constant dense<0xFF800000> : vector<2xf32>
    %175 = vector.multi_reduction <maximumf>, %174, %cst_61 [1] : vector<2x128xf32> to vector<2xf32>
    %176 = vector.shape_cast %175 : vector<2xf32> to vector<2x1xf32>
    %177 = vector.broadcast %176 : vector<2x1xf32> to vector<2x128xf32>
    %178 = arith.subf %174, %177 : vector<2x128xf32>
    %179 = math.exp %178 : vector<2x128xf32>
    %cst_62 = arith.constant 0.000000e+00 : f32
    %180 = vector.broadcast %cst_62 : f32 to vector<2x128xf32>
    %181 = arith.select %172, %179, %180 : vector<2x128xi1>, vector<2x128xf32>
    %cst_63 = arith.constant dense<0.000000e+00> : vector<2xf32>
    %182 = vector.multi_reduction <add>, %181, %cst_63 [1] : vector<2x128xf32> to vector<2xf32>
    %183 = vector.shape_cast %182 : vector<2xf32> to vector<2x1xf32>
    %184 = math.log %183 : vector<2x1xf32>
    %185 = arith.addf %176, %184 : vector<2x1xf32>
    %186 = vector.extract_strided_slice %16 {offsets = [0, 4], sizes = [2, 1], strides = [1, 1]} : vector<2x8xi32> to vector<2x1xi32>
    %c40_i32_64 = arith.constant 40 : i32
    %187 = vector.broadcast %c40_i32_64 : i32 to vector<2x1xi32>
    %188 = arith.addi %187, %186 : vector<2x1xi32>
    %189 = vector.broadcast %188 : vector<2x1xi32> to vector<2x128xi32>
    %190 = arith.cmpi eq, %17, %189 : vector<2x128xi32>
    %cst_65 = arith.constant 0.000000e+00 : f32
    %191 = vector.broadcast %cst_65 : f32 to vector<2x128xf32>
    %192 = arith.select %190, %14, %191 : vector<2x128xi1>, vector<2x128xf32>
    %cst_66 = arith.constant dense<0.000000e+00> : vector<2xf32>
    %193 = vector.multi_reduction <add>, %192, %cst_66 [1] : vector<2x128xf32> to vector<2xf32>
    %194 = vector.shape_cast %193 : vector<2xf32> to vector<2x1xf32>
    %195 = arith.subf %185, %194 : vector<2x1xf32>
    %cst_67 = arith.constant dense<0.000000e+00> : vector<1xf32>
    %196 = vector.multi_reduction <add>, %195, %cst_67 [0] : vector<2x1xf32> to vector<1xf32>
    %197 = vector.shape_cast %196 : vector<1xf32> to vector<1x1xf32>
    %c4_i32_68 = arith.constant 4 : i32
    %198 = vector.broadcast %c4_i32_68 : i32 to vector<1x128xi32>
    %199 = arith.cmpi eq, %18, %198 : vector<1x128xi32>
    %cst_69 = arith.constant 0.000000e+00 : f32
    %200 = vector.shape_cast %197 : vector<1x1xf32> to vector<1x1xf32>
    %201 = vector.broadcast %200 : vector<1x1xf32> to vector<1x128xf32>
    %202 = vector.broadcast %cst_69 : f32 to vector<1x128xf32>
    %203 = arith.select %199, %201, %202 : vector<1x128xi1>, vector<1x128xf32>
    %204 = arith.addf %167, %203 : vector<1x128xf32>
    %c0_70 = arith.constant 0 : index
    %c0_71 = arith.constant 0 : index
    %c0_72 = arith.constant 0 : index
    %205 = vector.load %arg9[%c0_70, %c0_71, %c0_72] : memref<1x1x128xf32, #tpu.memory_space<vmem>>, vector<1x1x128xf32>
    %206 = vector.shape_cast %205 : vector<1x1x128xf32> to vector<1x128xf32>
    %207 = vector.shape_cast %204 : vector<1x128xf32> to vector<1x1x128xf32>
    tpu.vector_store %arg9[%c0_70, %c0_71, %c0_72], %207 {strides = array<i32>} : memref<1x1x128xf32, #tpu.memory_space<vmem>>, vector<1x1x128xf32>,
    return
  }
  func.func @transform_0(%arg0: i32) -> (i32, i32) {
    %c0_i32 = arith.constant 0 : i32
    %c0_i32_0 = arith.constant 0 : i32
    return %arg0, %c0_i32 : i32, i32
  }
  func.func @transform_1(%arg0: i32) -> (i32, i32) {
    %c0_i32 = arith.constant 0 : i32
    %c0_i32_0 = arith.constant 0 : i32
    %c0_i32_1 = arith.constant 0 : i32
    return %c0_i32, %c0_i32_0 : i32, i32
  }
  func.func @transform_2(%arg0: i32) -> (i32, i32) {
    %c0_i32 = arith.constant 0 : i32
    %c0_i32_0 = arith.constant 0 : i32
    %c0_i32_1 = arith.constant 0 : i32
    return %c0_i32, %c0_i32_0 : i32, i32
  }
  func.func @transform_3(%arg0: i32) -> (i32, i32) {
    %c0_i32 = arith.constant 0 : i32
    %c0_i32_0 = arith.constant 0 : i32
    %c0_i32_1 = arith.constant 0 : i32
    return %c0_i32, %c0_i32_0 : i32, i32
  }
  func.func @transform_4(%arg0: i32) -> (i32, i32) {
    %c0_i32 = arith.constant 0 : i32
    %c0_i32_0 = arith.constant 0 : i32
    %c0_i32_1 = arith.constant 0 : i32
    return %c0_i32, %c0_i32_0 : i32, i32
  }
  func.func @transform_5(%arg0: i32) -> (i32, i32) {
    %c0_i32 = arith.constant 0 : i32
    %c0_i32_0 = arith.constant 0 : i32
    %c0_i32_1 = arith.constant 0 : i32
    return %c0_i32, %c0_i32_0 : i32, i32
  }
  func.func @transform_6(%arg0: i32) -> (i32, i32) {
    %c0_i32 = arith.constant 0 : i32
    %c0_i32_0 = arith.constant 0 : i32
    return %arg0, %c0_i32 : i32, i32
  }
  func.func @transform_7(%arg0: i32) -> (i32, i32) {
    %c0_i32 = arith.constant 0 : i32
    %c0_i32_0 = arith.constant 0 : i32
    return %arg0, %c0_i32 : i32, i32
  }
  func.func @transform_8(%arg0: i32) -> (i32, i32, i32) {
    %c0_i32 = arith.constant 0 : i32
    %c0_i32_0 = arith.constant 0 : i32
    %c0_i32_1 = arith.constant 0 : i32
    return %arg0, %c0_i32, %c0_i32_0 : i32, i32, i32
  }
}

</mosaic_0001>

<bundles_post_ra>
// kernel: tpu_custom_call.1
= control target key start
LH: loop header
LB: loop body
LE: loop exit
PB: predicated region body
PF: predicated region fallthrough
CT: control target
= control target key end

     0   :  { %14 = vsyncpa [#allocation3], 0  ;;  %vm374_vm0 = vcmask 1044480   ;;  %vm375_vm1 = vcmask 1045504   ;;  %v1709_v2 = vmov 65535   ;;  %vm277_vm2 = vcmask 220160   ;;  %s2220_s0 = inlined_call_operand.vmem [shape: bf16[512,27], index: 0, kind: input, shape index: {}]   ;;  %s2221_s1 = inlined_call_operand.vmem [shape: f32[2,512], index: 1, kind: input, shape index: {}]   ;;  %s2222_s2 = inlined_call_operand.vmem [shape: bf16[27,128], index: 2, kind: input, shape index: {}]   ;;  %s2223_s3 = inlined_call_operand.vmem [shape: f32[1,128], index: 3, kind: input, shape index: {}]   ;;  %s2224_s4 = inlined_call_operand.vmem [shape: f32[128,128], index: 4, kind: input, shape index: {}]   ;;  %s2225_s5 = inlined_call_operand.vmem [shape: f32[1,128], index: 5, kind: input, shape index: {}]   ;;  %s2226_s6 = inlined_call_operand.vmem [shape: s32[2,8], index: 6, kind: input, shape index: {}]   ;;  %s2227_s7 = inlined_call_operand.hbm [shape: f32[2,128], index: 7, kind: output, shape index: {0}]   ;;  %s2228_s8 = inlined_call_operand.hbm [shape: f32[1,1,128], index: 8, kind: output, shape index: {1}]  }
   0x1   :  { %v1606_v0 = vld [vmem:[%s2222_s2] sm:$0xff]   ;;  %v1607_v1 = vld [vmem:[%s2222_s2 + $0x8] sm:$0x3f]   ;;  %v376_v3 = vsel %vm374_vm0, 4294967295, %v1709_v2  ;;  %v1610_v8 = vld [vmem:[%s2220_s0 + $0x10] sm:$0xff]  }
   0x2   :  { %1397 = vmatprep.subr.bf16.mxu0 %v1606_v0  ;;  %v1608_v4 = vld [vmem:[%s2220_s0] sm:$0xff]   ;;  %v377_v5 = vsel %vm375_vm1, %v376_v3, 0  ;;  %v1609_v7 = vld [vmem:[%s2220_s0 + $0x8] sm:$0xff]   ;;  %v1611_v9 = vld [vmem:[%s2220_s0 + $0x18] sm:$0xff]  }
   0x3   :  { %1398 = vmatpush3.bf16.msra.mxu0 %v1606_v0  ;;  %v379_v6 = vand.u32 %v1607_v1, %v377_v5  ;;  %1401 = vmatprep.mubr.msk.bf16.mxu0 %vm277_vm2, %v1608_v4  ;;  %v1612_v10 = vld [vmem:[%s2220_s0 + $0x20] sm:$0xff]   ;;  %v1613_v11 = vld [vmem:[%s2220_s0 + $0x28] sm:$0xff]   ;;  %v1614_v12 = vld [vmem:[%s2220_s0 + $0x30] sm:$0xff]  }
   0x4   :  { %v1615_v13 = vld [vmem:[%s2220_s0 + $0x38] sm:$0xff]   ;;  %v1616_v14 = vld [vmem:[%s2220_s0 + $0x40] sm:$0xff]  }
   0x5   :  { %1399 = vmatprep.subr.bf16.mxu0 %v379_v6 }
   0x7   :  { %1400 = vmatpush3.bf16.msra.mxu0 %v379_v6 }
   0xa   :  { %1402 = vmatmul.mubr.msk.bf16.vlgmr.msra.gmra.mrb[0].mxu0 %vm277_vm2, %v1609_v7 }
   0xb   :  { %1405 = vmatprep.mubr.msk.bf16.mxu0 %vm277_vm2, %v1610_v8 }
  0x12   :  { %1406 = vmatmul.mubr.msk.bf16.gmra.mrb[4].mxu0 %vm277_vm2, %v1611_v9 }
  0x13   :  { %1409 = vmatprep.mubr.msk.bf16.mxu0 %vm277_vm2, %v1612_v10 }
  0x1a   :  { %1410 = vmatmul.mubr.msk.bf16.gmra.mrb[8].mxu0 %vm277_vm2, %v1613_v11 }
  0x1b   :  { %1413 = vmatprep.mubr.msk.bf16.mxu0 %vm277_vm2, %v1614_v12 }
  0x1c   :  { %15 = vsyncpa [#allocation5], 0  ;;  %v1617_v15 = vld [vmem:[%s2220_s0 + $0x48] sm:$0xff]   ;;  %v1618_v16 = vld [vmem:[%s2220_s0 + $0x50] sm:$0xff]   ;;  %v1710_v38 = vmov 1983009808   ;;  %v740_v40 = vlaneseq }
  0x1d   :  { %v1619_v17 = vld [vmem:[%s2220_s0 + $0x58] sm:$0xff]   ;;  %v1620_v18 = vld [vmem:[%s2220_s0 + $0x60] sm:$0xff]   ;;  %v1621_v19 = vld [vmem:[%s2220_s0 + $0x68] sm:$0xff]   ;;  %v738_v39 = vunpack.c.l.s4 %v1710_v38  ;;  %vm1712_vm3 = vmmov 0   ;;  %vm998_vm10 = vcmask 1041408  }
  0x1e   :  { %v1622_v20 = vld [vmem:[%s2220_s0 + $0x70] sm:$0xff]   ;;  %v1623_v21 = vld [vmem:[%s2220_s0 + $0x78] sm:$0xff]   ;;  %v1624_v22 = vld [vmem:[%s2220_s0 + $0x80] sm:$0xff]   ;;  %v741_v42 = vshrl.u32 %v740_v40, 7 }
  0x1f   :  { %v1625_v23 = vld [vmem:[%s2220_s0 + $0x88] sm:$0xff]   ;;  %v1626_v24 = vld [vmem:[%s2220_s0 + $0x90] sm:$0xff]   ;;  %v1627_v25 = vld [vmem:[%s2220_s0 + $0x98] sm:$0xff]   ;;  %v739_v41 = vunpack.c.0.s8 %v738_v39 }
  0x20   :  { %v1628_v26 = vld [vmem:[%s2220_s0 + $0xa0] sm:$0xff]   ;;  %v1629_v27 = vld [vmem:[%s2220_s0 + $0xa8] sm:$0xff]   ;;  %v1630_v28 = vld [vmem:[%s2220_s0 + $0xb0] sm:$0xff]  }
  0x21   :  { %v1631_v29 = vld [vmem:[%s2220_s0 + $0xb8] sm:$0xff]   ;;  %v1632_v30 = vld [vmem:[%s2220_s0 + $0xc0] sm:$0xff]   ;;  %v1633_v31 = vld [vmem:[%s2220_s0 + $0xc8] sm:$0xff]   ;;  %v742_v43 = vsub.s32 %v739_v41, %v741_v42 }
  0x22   :  { %1414 = vmatmul.mubr.msk.bf16.gmra.mrb[12].mxu0 %vm277_vm2, %v1615_v13  ;;  %v1634_v32 = vld [vmem:[%s2220_s0 + $0xd0] sm:$0xff]   ;;  %v1635_v33 = vld [vmem:[%s2220_s0 + $0xd8] sm:$0xff]   ;;  %v1636_v34 = vld [vmem:[%s2220_s0 + $0xe0] sm:$0xff]  }
  0x23   :  { %1417 = vmatprep.mubr.msk.bf16.mxu0 %vm277_vm2, %v1616_v14  ;;  %v1637_v35 = vld [vmem:[%s2220_s0 + $0xe8] sm:$0xff]   ;;  %v1638_v36 = vld [vmem:[%s2220_s0 + $0xf0] sm:$0xff]   ;;  %v1639_v37 = vld [vmem:[%s2220_s0 + $0xf8] sm:$0xff]  }
  0x24   :  { %v734_v44 = vld [vmem:[%s2221_s1] sm:$0xff] }
  0x25   :  { %v1904_v45 = vrot.slane %v734_v44, %v742_v43  ;;  %v1911_v47 = vld [vmem:[%s2223_s3] ss:$0 sm:$0xff]  ;;  %v736_v51 = vcombine.high %v734_v44, %v734_v44 }
  0x27   :  { %v751_v46 = vcombine.high %v1904_v45, %v1904_v45  ;;  %v1917_v59 = vrot.slane %v736_v51, %v742_v43 }
  0x29   :  { %821 = vmatprep.mubr.f32.mxu1 %v751_v46 }
  0x2a   :  { %1418 = vmatmul.mubr.msk.bf16.gmra.mrb[16].mxu0 %vm277_vm2, %v1617_v15 }
  0x2b   :  { %1421 = vmatprep.mubr.msk.bf16.mxu0 %vm277_vm2, %v1618_v16 }
  0x32   :  { %1422 = vmatmul.mubr.msk.bf16.gmra.mrb[20].mxu0 %vm277_vm2, %v1619_v17 }
  0x33   :  { %1425 = vmatprep.mubr.msk.bf16.mxu0 %vm277_vm2, %v1620_v18 }
  0x3a   :  { %1426 = vmatmul.mubr.msk.bf16.gmra.mrb[24].mxu0 %vm277_vm2, %v1621_v19 }
  0x3b   :  { %1429 = vmatprep.mubr.msk.bf16.mxu0 %vm277_vm2, %v1622_v20 }
  0x42   :  { %1430 = vmatmul.mubr.msk.bf16.gmra.mrb[28].mxu0 %vm277_vm2, %v1623_v21 }
  0x43   :  { %1433 = vmatprep.mubr.msk.bf16.mxu0 %vm277_vm2, %v1624_v22 }
  0x4a   :  { %1434 = vmatmul.mubr.msk.bf16.gmra.mrb[32].mxu0 %vm277_vm2, %v1625_v23 }
  0x4b   :  { %1437 = vmatprep.mubr.msk.bf16.mxu0 %vm277_vm2, %v1626_v24 }
  0x52   :  { %1438 = vmatmul.mubr.msk.bf16.gmra.mrb[36].mxu0 %vm277_vm2, %v1627_v25 }
  0x53   :  { %1441 = vmatprep.mubr.msk.bf16.mxu0 %vm277_vm2, %v1628_v26 }
  0x5a   :  { %1442 = vmatmul.mubr.msk.bf16.gmra.mrb[40].mxu0 %vm277_vm2, %v1629_v27 }
  0x5b   :  { %1445 = vmatprep.mubr.msk.bf16.mxu0 %vm277_vm2, %v1630_v28 }
  0x62   :  { %1446 = vmatmul.mubr.msk.bf16.gmra.mrb[44].mxu0 %vm277_vm2, %v1631_v29 }
  0x63   :  { %1449 = vmatprep.mubr.msk.bf16.mxu0 %vm277_vm2, %v1632_v30 }
  0x6a   :  { %1450 = vmatmul.mubr.msk.bf16.gmra.mrb[48].mxu0 %vm277_vm2, %v1633_v31 }
  0x6b   :  { %1453 = vmatprep.mubr.msk.bf16.mxu0 %vm277_vm2, %v1634_v32 }
  0x72   :  { %1454 = vmatmul.mubr.msk.bf16.gmra.mrb[52].mxu0 %vm277_vm2, %v1635_v33 }
  0x73   :  { %1457 = vmatprep.mubr.msk.bf16.mxu0 %vm277_vm2, %v1636_v34 }
  0x7a   :  { %1458 = vmatmul.mubr.msk.bf16.gmra.mrb[56].mxu0 %vm277_vm2, %v1637_v35 }
  0x7b   :  { %1461 = vmatprep.mubr.msk.bf16.mxu0 %vm277_vm2, %v1638_v36 }
  0x82   :  { %1462 = vmatmul.mubr.msk.bf16.gmra.mrb[60].mxu0 %vm277_vm2, %v1639_v37 }
  0xdd   :  { %v1403_v48 = vpop.f32.mrb[0].mxu0 }
  0xde   :  { %v424_v49 = vadd.f32 %v1403_v48, %v1911_v47  ;;  %v415_v50 = vpop.f32.mrb[1].mxu0 }
  0xdf   :  { %v416_v52 = vadd.f32 %v1911_v47, %v415_v50  ;;  %v1404_v53 = vpop.f32.mrb[2].mxu0 }
  0xe0   :  { %v427_v54 = vadd.f32 %v1404_v53, %v1911_v47  ;;  %v418_v55 = vpop.f32.mrb[3].mxu0  ;;  %v672_v57 = vmax.f32 %v424_v49, 0.0 }
  0xe1   :  { %v419_v56 = vadd.f32 %v1911_v47, %v418_v55  ;;  %v670_v60 = vmax.f32 %v416_v52, 0.0 }
  0xe2   :  { %v673_v58 = vmax.f32 %v427_v54, 0.0 }
  0xe3   :  { %v671_v61 = vmax.f32 %v419_v56, 0.0 }
  0xe4   :  { %v1919_v62 = vpack.c.bf16 %v673_v58, %v672_v57 }
  0xe5   :  { %v1407_v63 = vpop.f32.mrb[4].mxu0  ;;  %v1921_v0 = vpack.c.bf16 %v671_v61, %v670_v60 }
  0xe6   :  { %v440_v1 = vadd.f32 %v1407_v63, %v1911_v47  ;;  %v431_v2 = vpop.f32.mrb[5].mxu0 }
  0xe7   :  { %v432_v3 = vadd.f32 %v1911_v47, %v431_v2  ;;  %v1408_v4 = vpop.f32.mrb[6].mxu0 }
  0xe8   :  { %v443_v5 = vadd.f32 %v1408_v4, %v1911_v47  ;;  %v434_v6 = vpop.f32.mrb[7].mxu0  ;;  %v676_v8 = vmax.f32 %v440_v1, 0.0 }
  0xe9   :  { %v435_v7 = vadd.f32 %v1911_v47, %v434_v6  ;;  %v674_v10 = vmax.f32 %v432_v3, 0.0 }
  0xea   :  { %v677_v9 = vmax.f32 %v443_v5, 0.0 }
  0xeb   :  { %v675_v11 = vmax.f32 %v435_v7, 0.0 }
  0xec   :  { %v1927_v12 = vpack.c.bf16 %v677_v9, %v676_v8 }
  0xed   :  { %v1929_v13 = vpack.c.bf16 %v675_v11, %v674_v10  ;;  %v1411_v14 = vpop.f32.mrb[8].mxu0 }
  0xee   :  { %v456_v15 = vadd.f32 %v1411_v14, %v1911_v47  ;;  %v447_v16 = vpop.f32.mrb[9].mxu0 }
  0xef   :  { %v448_v17 = vadd.f32 %v1911_v47, %v447_v16  ;;  %v1412_v18 = vpop.f32.mrb[10].mxu0 }
  0xf0   :  { %v459_v19 = vadd.f32 %v1412_v18, %v1911_v47  ;;  %v450_v20 = vpop.f32.mrb[11].mxu0  ;;  %v680_v22 = vmax.f32 %v456_v15, 0.0 }
  0xf1   :  { %v451_v21 = vadd.f32 %v1911_v47, %v450_v20  ;;  %v678_v24 = vmax.f32 %v448_v17, 0.0 }
  0xf2   :  { %v681_v23 = vmax.f32 %v459_v19, 0.0 }
  0xf3   :  { %v679_v25 = vmax.f32 %v451_v21, 0.0 }
  0xf4   :  { %v1935_v26 = vpack.c.bf16 %v681_v23, %v680_v22 }
  0xf5   :  { %v1937_v27 = vpack.c.bf16 %v679_v25, %v678_v24  ;;  %v1415_v28 = vpop.f32.mrb[12].mxu0 }
  0xf6   :  { %v472_v29 = vadd.f32 %v1415_v28, %v1911_v47  ;;  %v463_v30 = vpop.f32.mrb[13].mxu0 }
  0xf7   :  { %v464_v31 = vadd.f32 %v1911_v47, %v463_v30  ;;  %v1416_v32 = vpop.f32.mrb[14].mxu0 }
  0xf8   :  { %v475_v33 = vadd.f32 %v1416_v32, %v1911_v47  ;;  %v466_v34 = vpop.f32.mrb[15].mxu0  ;;  %v684_v36 = vmax.f32 %v472_v29, 0.0 }
  0xf9   :  { %v467_v35 = vadd.f32 %v1911_v47, %v466_v34  ;;  %v682_v38 = vmax.f32 %v464_v31, 0.0 }
  0xfa   :  { %v685_v37 = vmax.f32 %v475_v33, 0.0 }
  0xfb   :  { %v683_v39 = vmax.f32 %v467_v35, 0.0 }
  0xfc   :  { %v1943_v41 = vpack.c.bf16 %v685_v37, %v684_v36 }
  0xfd   :  { %v1945_v42 = vpack.c.bf16 %v683_v39, %v682_v38  ;;  %v1419_v43 = vpop.f32.mrb[16].mxu0 }
  0xfe   :  { %v488_v44 = vadd.f32 %v1419_v43, %v1911_v47  ;;  %v479_v46 = vpop.f32.mrb[17].mxu0 }
  0xff   :  { %v480_v48 = vadd.f32 %v1911_v47, %v479_v46  ;;  %v1420_v49 = vpop.f32.mrb[18].mxu0 }
 0x100   :  { %v491_v50 = vadd.f32 %v1420_v49, %v1911_v47  ;;  %v482_v51 = vpop.f32.mrb[19].mxu0  ;;  %v688_v53 = vmax.f32 %v488_v44, 0.0 }
 0x101   :  { %v483_v52 = vadd.f32 %v1911_v47, %v482_v51  ;;  %v686_v55 = vmax.f32 %v480_v48, 0.0 }
 0x102   :  { %v689_v54 = vmax.f32 %v491_v50, 0.0 }
 0x103   :  { %v687_v56 = vmax.f32 %v483_v52, 0.0 }
 0x104   :  { %v1504_v57 = vpack.c.bf16 %v689_v54, %v688_v53 }
 0x105   :  { %v1423_v58 = vpop.f32.mrb[20].mxu0  ;;  %v1500_v60 = vpack.c.bf16 %v687_v56, %v686_v55  ;;  %v752_v56 = vcombine.high %v1917_v59, %v1917_v59 }
 0x106   :  { %v504_v61 = vadd.f32 %v1423_v58, %v1911_v47  ;;  %v495_v63 = vpop.f32.mrb[21].mxu0 }
 0x107   :  { %v496_v1 = vadd.f32 %v1911_v47, %v495_v63  ;;  %v1424_v2 = vpop.f32.mrb[22].mxu0  ;;  %1501 = vmatprep.subr.bf16.mxu1 %v1500_v60 }
 0x108   :  { %v507_v3 = vadd.f32 %v1424_v2, %v1911_v47  ;;  %v498_v4 = vpop.f32.mrb[23].mxu0  ;;  %1503 = vmatpush3.bf16.msra.mxu1 %v1921_v0  ;;  %v692_v6 = vmax.f32 %v504_v61, 0.0 }
 0x109   :  { %v499_v5 = vadd.f32 %v1911_v47, %v498_v4  ;;  %1505 = vmatprep.subr.bf16.mxu1 %v1504_v57  ;;  %v690_v8 = vmax.f32 %v496_v1, 0.0 }
 0x10a   :  { %v693_v7 = vmax.f32 %v507_v3, 0.0 }
 0x10b   :  { %v691_v9 = vmax.f32 %v499_v5, 0.0 }
 0x10c   :  { %v1512_v10 = vpack.c.bf16 %v693_v7, %v692_v6  ;;  %1507 = vmatpush3.bf16.msra.mxu1 %v1919_v62 }
 0x10d   :  { %v1508_v11 = vpack.c.bf16 %v691_v9, %v690_v8  ;;  %v1427_v14 = vpop.f32.mrb[24].mxu0 }
 0x10e   :  { %v520_v15 = vadd.f32 %v1427_v14, %v1911_v47  ;;  %v511_v16 = vpop.f32.mrb[25].mxu0 }
 0x10f   :  { %v512_v17 = vadd.f32 %v1911_v47, %v511_v16  ;;  %v1428_v18 = vpop.f32.mrb[26].mxu0  ;;  %1509 = vmatprep.subr.bf16.mxu1 %v1508_v11 }
 0x110   :  { %v523_v0 = vadd.f32 %v1428_v18, %v1911_v47  ;;  %v514_v19 = vpop.f32.mrb[27].mxu0  ;;  %1511 = vmatpush3.bf16.msra.mxu1 %v1929_v13  ;;  %v696_v21 = vmax.f32 %v520_v15, 0.0 }
 0x111   :  { %v515_v20 = vadd.f32 %v1911_v47, %v514_v19  ;;  %1513 = vmatprep.subr.bf16.mxu1 %v1512_v10  ;;  %v694_v62 = vmax.f32 %v512_v17, 0.0 }
 0x112   :  { %v697_v22 = vmax.f32 %v523_v0, 0.0 }
 0x113   :  { %v695_v23 = vmax.f32 %v515_v20, 0.0 }
 0x114   :  { %v1520_v24 = vpack.c.bf16 %v697_v22, %v696_v21  ;;  %1515 = vmatpush3.bf16.msra.mxu1 %v1927_v12 }
 0x115   :  { %v1516_v25 = vpack.c.bf16 %v695_v23, %v694_v62  ;;  %v1431_v28 = vpop.f32.mrb[28].mxu0 }
 0x116   :  { %v536_v29 = vadd.f32 %v1431_v28, %v1911_v47  ;;  %v527_v30 = vpop.f32.mrb[29].mxu0 }
 0x117   :  { %v528_v31 = vadd.f32 %v1911_v47, %v527_v30  ;;  %v1432_v32 = vpop.f32.mrb[30].mxu0  ;;  %1517 = vmatprep.subr.bf16.mxu1 %v1516_v25 }
 0x118   :  { %v539_v13 = vadd.f32 %v1432_v32, %v1911_v47  ;;  %v530_v33 = vpop.f32.mrb[31].mxu0  ;;  %1519 = vmatpush3.bf16.msra.mxu1 %v1937_v27  ;;  %v700_v35 = vmax.f32 %v536_v29, 0.0 }
 0x119   :  { %v531_v34 = vadd.f32 %v1911_v47, %v530_v33  ;;  %1521 = vmatprep.subr.bf16.mxu1 %v1520_v24  ;;  %v698_v12 = vmax.f32 %v528_v31, 0.0 }
 0x11a   :  { %v701_v36 = vmax.f32 %v539_v13, 0.0 }
 0x11b   :  { %v699_v37 = vmax.f32 %v531_v34, 0.0 }
 0x11c   :  { %v1528_v38 = vpack.c.bf16 %v701_v36, %v700_v35  ;;  %1523 = vmatpush3.bf16.msra.mxu1 %v1935_v26 }
 0x11d   :  { %v1524_v39 = vpack.c.bf16 %v699_v37, %v698_v12  ;;  %v1435_v43 = vpop.f32.mrb[32].mxu0 }
 0x11e   :  { %v552_v44 = vadd.f32 %v1435_v43, %v1911_v47  ;;  %v543_v46 = vpop.f32.mrb[33].mxu0 }
 0x11f   :  { %v544_v48 = vadd.f32 %v1911_v47, %v543_v46  ;;  %v1436_v49 = vpop.f32.mrb[34].mxu0  ;;  %1525 = vmatprep.subr.bf16.mxu1 %v1524_v39 }
 0x120   :  { %v555_v27 = vadd.f32 %v1436_v49, %v1911_v47  ;;  %v546_v50 = vpop.f32.mrb[35].mxu0  ;;  %1527 = vmatpush3.bf16.msra.mxu1 %v1945_v42  ;;  %v704_v52 = vmax.f32 %v552_v44, 0.0 }
 0x121   :  { %v547_v51 = vadd.f32 %v1911_v47, %v546_v50  ;;  %1529 = vmatprep.subr.bf16.mxu1 %v1528_v38  ;;  %v702_v26 = vmax.f32 %v544_v48, 0.0 }
 0x122   :  { %v705_v53 = vmax.f32 %v555_v27, 0.0 }
 0x123   :  { %v703_v54 = vmax.f32 %v547_v51, 0.0 }
 0x124   :  { %v1974_v55 = vpack.c.bf16 %v705_v53, %v704_v52  ;;  %1531 = vmatpush3.bf16.msra.mxu1 %v1943_v41 }
 0x125   :  { %v1979_v57 = vpack.c.bf16 %v703_v54, %v702_v26  ;;  %v1439_v58 = vpop.f32.mrb[36].mxu0 }
 0x126   :  { %v568_v60 = vadd.f32 %v1439_v58, %v1911_v47  ;;  %v559_v42 = vpop.f32.mrb[37].mxu0 }
 0x127   :  { %v560_v61 = vadd.f32 %v1911_v47, %v559_v42  ;;  %v1440_v63 = vpop.f32.mrb[38].mxu0  ;;  %822 = vmatmul.mubr.f32.vlgmr.msra.gmra.mrb[0].mxu1 %v1904_v45 }
 0x128   :  { %v571_v1 = vadd.f32 %v1440_v63, %v1911_v47  ;;  %v562_v2 = vpop.f32.mrb[39].mxu0  ;;  %891 = vmatprep.mubr.f32.mxu1 %v752_v56  ;;  %v708_v3 = vmax.f32 %v568_v60, 0.0 }
 0x129   :  { %v563_v41 = vadd.f32 %v1911_v47, %v562_v2  ;;  %v706_v5 = vmax.f32 %v560_v61, 0.0 }
 0x12a   :  { %v709_v4 = vmax.f32 %v571_v1, 0.0 }
 0x12b   :  { %v707_v6 = vmax.f32 %v563_v41, 0.0 }
 0x12c   :  { %v1986_v7 = vpack.c.bf16 %v709_v4, %v708_v3 }
 0x12d   :  { %v1988_v8 = vpack.c.bf16 %v707_v6, %v706_v5  ;;  %v1443_v9 = vpop.f32.mrb[40].mxu0 }
 0x12e   :  { %v584_v10 = vadd.f32 %v1443_v9, %v1911_v47  ;;  %v575_v11 = vpop.f32.mrb[41].mxu0 }
 0x12f   :  { %v576_v45 = vadd.f32 %v1911_v47, %v575_v11  ;;  %v1444_v14 = vpop.f32.mrb[42].mxu0 }
 0x130   :  { %v587_v15 = vadd.f32 %v1444_v14, %v1911_v47  ;;  %v578_v16 = vpop.f32.mrb[43].mxu0  ;;  %v712_v18 = vmax.f32 %v584_v10, 0.0 }
 0x131   :  { %v579_v17 = vadd.f32 %v1911_v47, %v578_v16  ;;  %v710_v19 = vmax.f32 %v576_v45, 0.0 }
 0x132   :  { %v713_v0 = vmax.f32 %v587_v15, 0.0 }
 0x133   :  { %v711_v20 = vmax.f32 %v579_v17, 0.0 }
 0x134   :  { %v1994_v21 = vpack.c.bf16 %v713_v0, %v712_v18 }
 0x135   :  { %v1996_v22 = vpack.c.bf16 %v711_v20, %v710_v19  ;;  %v1447_v62 = vpop.f32.mrb[44].mxu0 }
 0x136   :  { %v600_v23 = vadd.f32 %v1447_v62, %v1911_v47  ;;  %v591_v24 = vpop.f32.mrb[45].mxu0 }
 0x137   :  { %v592_v25 = vadd.f32 %v1911_v47, %v591_v24  ;;  %v1448_v28 = vpop.f32.mrb[46].mxu0 }
 0x138   :  { %v603_v29 = vadd.f32 %v1448_v28, %v1911_v47  ;;  %v594_v30 = vpop.f32.mrb[47].mxu0  ;;  %v716_v32 = vmax.f32 %v600_v23, 0.0 }
 0x139   :  { %v595_v31 = vadd.f32 %v1911_v47, %v594_v30  ;;  %v714_v33 = vmax.f32 %v592_v25, 0.0 }
 0x13a   :  { %v717_v13 = vmax.f32 %v603_v29, 0.0 }
 0x13b   :  { %v715_v34 = vmax.f32 %v595_v31, 0.0 }
 0x13c   :  { %v2002_v35 = vpack.c.bf16 %v717_v13, %v716_v32 }
 0x13d   :  { %v2004_v36 = vpack.c.bf16 %v715_v34, %v714_v33  ;;  %v1451_v12 = vpop.f32.mrb[48].mxu0  ;;  %v1711_v34 = vmov 0.0|0.0  }
 0x13e   :  { %v616_v37 = vadd.f32 %v1451_v12, %v1911_v47  ;;  %v607_v38 = vpop.f32.mrb[49].mxu0  ;;  %v901_v12 = vld [vmem:[%s2224_s4 + $0x20] sm:$0xff] }
 0x13f   :  { %v608_v39 = vadd.f32 %v1911_v47, %v607_v38  ;;  %v1452_v43 = vpop.f32.mrb[50].mxu0 }
 0x140   :  { %v619_v44 = vadd.f32 %v1452_v43, %v1911_v47  ;;  %v610_v46 = vpop.f32.mrb[51].mxu0  ;;  %v720_v49 = vmax.f32 %v616_v37, 0.0  ;;  %v902_v37 = vld [vmem:[%s2224_s4 + $0x28] sm:$0xff]  ;;  %v904_v43 = vld [vmem:[%s2224_s4 + $0x38] sm:$0xff] }
 0x141   :  { %v611_v48 = vadd.f32 %v1911_v47, %v610_v46  ;;  %v718_v50 = vmax.f32 %v608_v39, 0.0  ;;  %v1571_v38 = vpack.c.bf16 %v902_v37, %v901_v12  ;;  %v903_v39 = vld [vmem:[%s2224_s4 + $0x30] sm:$0xff]  ;;  %v905_v46 = vld [vmem:[%s2224_s4 + $0x40] sm:$0xff] }
 0x142   :  { %v721_v27 = vmax.f32 %v619_v44, 0.0  ;;  %v1574_v44 = vpack.c.bf16 %v904_v43, %v903_v39 }
 0x143   :  { %v719_v51 = vmax.f32 %v611_v48, 0.0  ;;  %v906_v48 = vld [vmem:[%s2224_s4 + $0x48] sm:$0xff] }
 0x144   :  { %v1536_v52 = vpack.c.bf16 %v721_v27, %v720_v49  ;;  %v1577_v49 = vpack.c.bf16 %v906_v48, %v905_v46  ;;  %v907_v27 = vld [vmem:[%s2224_s4 + $0x50] sm:$0xff] }
 0x145   :  { %v1532_v53 = vpack.c.bf16 %v719_v51, %v718_v50  ;;  %v1455_v26 = vpop.f32.mrb[52].mxu0  ;;  %v908_v50 = vld [vmem:[%s2224_s4 + $0x58] sm:$0xff] }
 0x146   :  { %v632_v54 = vadd.f32 %v1455_v26, %v1911_v47  ;;  %v623_v56 = vpop.f32.mrb[53].mxu0  ;;  %v1580_v51 = vpack.c.bf16 %v908_v50, %v907_v27 }
 0x147   :  { %v624_v58 = vadd.f32 %v1911_v47, %v623_v56  ;;  %v1456_v60 = vpop.f32.mrb[54].mxu0  ;;  %1533 = vmatprep.subr.bf16.mxu1 %v1532_v53  ;;  %v910_v53 = vld [vmem:[%s2224_s4 + $0x68] sm:$0xff]  ;;  %v912_v56 = vld [vmem:[%s2224_s4 + $0x78] sm:$0xff] }
 0x148   :  { %v635_v42 = vadd.f32 %v1456_v60, %v1911_v47  ;;  %v626_v61 = vpop.f32.mrb[55].mxu0  ;;  %1535 = vmatpush3.bf16.msra.mxu1 %v1979_v57  ;;  %v724_v1 = vmax.f32 %v632_v54, 0.0  ;;  %v911_v54 = vld [vmem:[%s2224_s4 + $0x70] sm:$0xff]  ;;  %v1713_v60 = vmov 0.0  }
 0x149   :  { %v627_v63 = vadd.f32 %v1911_v47, %v626_v61  ;;  %1537 = vmatprep.subr.bf16.mxu1 %v1536_v52  ;;  %v722_v41 = vmax.f32 %v624_v58, 0.0  ;;  %v909_v52 = vld [vmem:[%s2224_s4 + $0x60] sm:$0xff]  ;;  %v1586_v58 = vpack.c.bf16 %v912_v56, %v911_v54  ;;  %v1714_v61 = vmov 0  }
 0x14a   :  { %v725_v2 = vmax.f32 %v635_v42, 0.0  ;;  %v1583_v26 = vpack.c.bf16 %v910_v53, %v909_v52  ;;  %v991_v42 = vld [vmem:[%s2226_s6] sm:$0x3]  ;;  %1600 = vset.pattern.permute.xlu1 %v1714_v61 }
 0x14b   :  { %v723_v3 = vmax.f32 %v627_v63, 0.0  ;;  %1013 = vperm.xlu1 %1600, %v991_v42  }
 0x14c   :  { %v1544_v4 = vpack.c.bf16 %v725_v2, %v724_v1  ;;  %1539 = vmatpush3.bf16.msra.mxu1 %v1974_v55 }
 0x14d   :  { %v1540_v5 = vpack.c.bf16 %v723_v3, %v722_v41  ;;  %v1459_v6 = vpop.f32.mrb[56].mxu0 }
 0x14e   :  { %v648_v9 = vadd.f32 %v1459_v6, %v1911_v47  ;;  %v639_v10 = vpop.f32.mrb[57].mxu0  ;;  %v1715_v6 = vmov 2  }
 0x14f   :  { %v640_v11 = vadd.f32 %v1911_v47, %v639_v10  ;;  %v1460_v45 = vpop.f32.mrb[58].mxu0  ;;  %1541 = vmatprep.subr.bf16.mxu1 %v1540_v5  ;;  %1602 = vset.pattern.permute.xlu1 %v1715_v6  ;;  %v2083_v10 = vand.u32 127, %v740_v40 }
 0x150   :  { %v651_v57 = vadd.f32 %v1460_v45, %v1911_v47  ;;  %v642_v14 = vpop.f32.mrb[59].mxu0  ;;  %1543 = vmatpush3.bf16.msra.mxu1 %v1988_v8  ;;  %v728_v16 = vmax.f32 %v648_v9, 0.0  ;;  %v1716_v9 = vmov 1  }
 0x151   :  { %v643_v15 = vadd.f32 %v1911_v47, %v642_v14  ;;  %1545 = vmatprep.subr.bf16.mxu1 %v1544_v4  ;;  %v726_v55 = vmax.f32 %v640_v11, 0.0  ;;  %1601 = vset.pattern.permute.xlu0 %v1716_v9  ;;  %vm1031_vm4 = vcmp.ge.s32.totalorder %v2083_v10, 4  ;;  %vm1032_vm5 = vcmp.lt.s32.totalorder %v2083_v10, 12  ;;  %v1275_v11 = vld [vmem:[%s2225_s5] ss:$0 sm:$0xff]  ;;  %s1719_s5 = smov [#allocation2]  }
 0x152   :  { %v729_v17 = vmax.f32 %v651_v57, 0.0  ;;  %vm1068_vm6 = vcmp.ge.s32.totalorder %v2083_v10, 12  ;;  %vm1069_vm7 = vcmp.lt.s32.totalorder %v2083_v10, 24  ;;  %vm2092_vm8 = vmand %vm1031_vm4, %vm1032_vm5  ;;  %vm995_vm9 = vcmp.lt.s32.totalorder %v2083_v10, 4  ;;  %s1186_s2 = sshll.u32 %s1719_s5, 4  ;;  %s1187_s2 = int_to_ptr.vmem [resolvable:$true] %s1186_s2 }
 0x153   :  { %v727_v18 = vmax.f32 %v643_v15, 0.0  ;;  %vm2099_vm11 = vmand %vm1068_vm6, %vm1069_vm7  ;;  %vm1105_vm12 = vcmp.ge.s32.totalorder %v2083_v10, 24  ;;  %vm1106_vm13 = vcmp.lt.s32.totalorder %v2083_v10, 40  ;;  %vm1142_vm15 = vcmp.ge.s32.totalorder %v2083_v10, 40  ;;  %s1661_s13 = scalar_lea.vmem %s1187_s2, 32  ;;  %p1666_p1 = scmp.lt.s32.totalorder %s1187_s2, %s1187_s2 }
 0x154   :  { %v1552_v0 = vpack.c.bf16 %v729_v17, %v728_v16  ;;  %1547 = vmatpush3.bf16.msra.mxu1 %v1986_v7  ;;  %vm2117_vm14 = vmand %vm1105_vm12, %vm1106_vm13  ;;  %vm1143_vm0 = vcmp.lt.s32.totalorder %v2083_v10, 60  ;;  %p1662_p0 = scmp.ne.s32.totalorder %s1187_s2, %s1661_s13  ;;  %p1667_p2 = scmp.lt.s32.totalorder %s1661_s13, %s1661_s13 }
 0x155   :  { %v1548_v19 = vpack.c.bf16 %v727_v18, %v726_v55  ;;  %v1463_v20 = vpop.f32.mrb[60].mxu0  ;;  %vm2127_vm1 = vmand %vm1142_vm15, %vm1143_vm0 }
 0x156   :  { %v664_v62 = vadd.f32 %v1463_v20, %v1911_v47  ;;  %v655_v23 = vpop.f32.mrb[61].mxu0  ;;  %p1668_p3 = por %p1667_p2, %p1666_p1 }
 0x157   :  { %v656_v24 = vadd.f32 %v1911_v47, %v655_v23  ;;  %v1464_v25 = vpop.f32.mrb[62].mxu0  ;;  %1549 = vmatprep.subr.bf16.mxu1 %v1548_v19 }
 0x158   :  { %v667_v8 = vadd.f32 %v1464_v25, %v1911_v47  ;;  %v658_v28 = vpop.f32.mrb[63].mxu0  ;;  %1551 = vmatpush3.bf16.msra.mxu1 %v1996_v22  ;;  %v732_v30 = vmax.f32 %v664_v62, 0.0  ;;  %v898_v22 = vld [vmem:[%s2224_s4 + $0x8] sm:$0xff]  ;;  %p1669_p4 = pnand %p1668_p3, %p1662_p0 }
 0x159   :  { %v659_v29 = vadd.f32 %v1911_v47, %v658_v28  ;;  %1553 = vmatprep.subr.bf16.mxu1 %v1552_v0  ;;  %v730_v7 = vmax.f32 %v656_v24, 0.0  ;;  %v897_v47 = vld [vmem:[%s2224_s4] sm:$0xff]  ;;  %v1085_v28 = vadd.s32 12, %v991_v42 }
 0x15a   :  { %v733_v31 = vmax.f32 %v667_v8, 0.0 }
 0x15b   :  { %v731_v32 = vmax.f32 %v659_v29, 0.0  ;;  %v1122_v29 = vadd.s32 24, %v991_v42 }
 0x15c   :  { %v1560_v13 = vpack.c.bf16 %v733_v31, %v732_v30  ;;  %1555 = vmatpush3.bf16.msra.mxu1 %v1994_v21  ;;  %v899_v21 = vld [vmem:[%s2224_s4 + $0x10] sm:$0xff]  ;;  %v1717_v30 = vmov 3   ;;  %v1159_v31 = vadd.s32 40, %v991_v42 }
 0x15d   :  { %v1556_v33 = vpack.c.bf16 %v731_v32, %v730_v7  ;;  %v1718_v7 = vmov 4   ;;  %v1048_v32 = vadd.s32 4, %v991_v42 }
 0x15f   :  { %1557 = vmatprep.subr.bf16.mxu1 %v1556_v33 }
 0x160   :  { %1559 = vmatpush3.bf16.msra.mxu1 %v2004_v36  ;;  %v1565_v36 = vpack.c.bf16 %v898_v22, %v897_v47 }
 0x161   :  { %1561 = vmatprep.subr.bf16.mxu1 %v1560_v13 }
 0x164   :  { %1563 = vmatpush3.bf16.msra.mxu1 %v2002_v35  ;;  %v900_v35 = vld [vmem:[%s2224_s4 + $0x18] sm:$0xff] }
 0x165   :  { %1564 = vmatprep.subr.bf16.mxu1 %v1711_v34 }
 0x167   :  { %892 = vmatmul.mubr.f32.vlgmr.msra.gmra.mrb[2].mxu1 %v1917_v59  ;;  %v1568_v59 = vpack.c.bf16 %v900_v35, %v899_v21 }
 0x168   :  { %1566 = vmatpush3.bf16.msra.mxu1 %v1565_v36  ;;  %1497 = vmatprep.mubr.msk.f32.mxu1 %vm1712_vm3, %v1713_v60 }
 0x169   :  { %1567 = vmatprep.subr.bf16.mxu1 %v1711_v34 }
 0x16c   :  { %1569 = vmatpush3.bf16.msra.mxu1 %v1568_v59 }
 0x16d   :  { %1570 = vmatprep.subr.bf16.mxu1 %v1711_v34 }
 0x170   :  { %1572 = vmatpush3.bf16.msra.mxu1 %v1571_v38 }
 0x171   :  { %1573 = vmatprep.subr.bf16.mxu1 %v1711_v34 }
 0x174   :  { %1575 = vmatpush3.bf16.msra.mxu1 %v1574_v44 }
 0x175   :  { %1576 = vmatprep.subr.bf16.mxu1 %v1711_v34 }
 0x178   :  { %1578 = vmatpush3.bf16.msra.mxu1 %v1577_v49 }
 0x179   :  { %1579 = vmatprep.subr.bf16.mxu1 %v1711_v34 }
 0x17c   :  { %1581 = vmatpush3.bf16.msra.mxu1 %v1580_v51 }
 0x17d   :  { %1582 = vmatprep.subr.bf16.mxu1 %v1711_v34 }
 0x180   :  { %1584 = vmatpush3.bf16.msra.mxu1 %v1583_v26 }
 0x181   :  { %1585 = vmatprep.subr.bf16.mxu1 %v1711_v34 }
 0x184   :  { %1587 = vmatpush3.bf16.msra.mxu1 %v1586_v58 }
 0x1ca   :  { %v1014_v13 = vpop.permute.xlu1 %1013 }
 0x1cb   :  { %vm1015_vm2 = vcmp.eq.s32.totalorder %v2083_v10, %v1014_v13 }
 0x1fa   :  { %v1342_v63 = vpop.f32.mrb[0].mxu1 }
 0x1fb   :  { %v1343_v1 = vpop.f32.mrb[1].mxu1 }
 0x1fc   :  { %v1344_v2 = vadd.f32 %v1343_v1, %v1342_v63 }
 0x23a   :  { %v1377_v41 = vpop.f32.mrb[2].mxu1 }
 0x23b   :  { %v1378_v3 = vpop.f32.mrb[3].mxu1 }
 0x23c   :  { %v1379_v4 = vadd.f32 %v1378_v3, %v1377_v41 }
 0x23e   :  { %v894_v5 = vadd.f32 %v1379_v4, %v1344_v2 }
 0x240   :  { %1498 = vmatmul.mubr.f32.vlgmr.msra.gmra.mrb[4].mxu1 %v894_v5 }
 0x313   :  { %v986_v45 = vpop.f32.mrb[4].mxu1 }
 0x314   :  { %v2097_v40 = vadd.f32 %v1275_v11, %v986_v45  ;;  %v1499_v14 = vpop.f32.mrb[5].mxu1 }
 0x316   :  { %990 = vst [vmem:[#allocation2] sm:$0x3] %v2097_v40  ;;  %v1034_v16 = vsel %vm2092_vm8, %v2097_v40, -1e+30  ;;  %v997_v17 = vsel %vm995_vm9, %v2097_v40, -1e+30 }
 0x317   :  { %v1035_v55 = vsel %vm998_vm10, %v1034_v16, -inf  ;;  %v999_v18 = vsel %vm998_vm10, %v997_v17, -inf  ;;  %v1071_v0 = vsel %vm2099_vm11, %v2097_v40, -1e+30  ;;  %v1108_v62 = vsel %vm2117_vm14, %v2097_v40, -1e+30 }
 0x318   :  { %1036 = vmax.xlane.f32.xlu1 %v1035_v55  ;;  %1000 = vmax.xlane.f32.xlu0 %v999_v18  ;;  %v1072_v20 = vsel %vm998_vm10, %v1071_v0, -inf  ;;  %v1109_v24 = vsel %vm998_vm10, %v1108_v62, -inf  ;;  %v1145_v25 = vsel %vm2127_vm1, %v2097_v40, -1e+30  ;;  %v1016_v33 = vsel %vm1015_vm2, %v2097_v40, 0.0 }
 0x319   :  { %v1146_v8 = vsel %vm998_vm10, %v1145_v25, -inf  ;;  %v1017_v47 = vsel %vm998_vm10, %v1016_v33, 0.0 }
 0x31c   :  { %1073 = vmax.xlane.f32.xlu0 %v1072_v20 }
 0x320   :  { %1110 = vmax.xlane.f32.xlu0 %v1109_v24 }
 0x324   :  { %1147 = vmax.xlane.f32.xlu0 %v1146_v8 }
 0x329   :  { %1087 = vperm.xlu1 %1602, %v1085_v28  }
 0x32d   :  { %1603 = vset.pattern.permute.xlu1 %v1717_v30 }
 0x32e   :  { %1124 = vperm.xlu1 %1603, %v1122_v29  }
 0x332   :  { %1604 = vset.pattern.permute.xlu1 %v1718_v7 }
 0x333   :  { %1161 = vperm.xlu1 %1604, %v1159_v31  }
 0x33a   :  { %1050 = vperm.xlu0 %1601, %v1048_v32  }
 0x33e   :  { %1605 = vset.pattern.permute.xlu0 %v1718_v7 }
 0x359   :  { %1018 = vadd.xlane.f32.xlu0 %v1017_v47 }
 0x3a5   :  { %v2139_v22 = vpop.xlane.xlu1 %1036  ;;  %v2141_v21 = vpop.xlane.xlu0 %1000 }
 0x3a6   :  { %v1038_v34 = vsub.f32 %v1034_v16, %v2139_v22  ;;  %v1002_v36 = vsub.f32 %v997_v17, %v2141_v21 }
 0x3a8   :  { %v1039_v35 = vmul.f32 1.442695, %v1038_v34  ;;  %v1003_v59 = vmul.f32 1.442695, %v1002_v36 }
 0x3a9   :  { %v2145_v12 = vpop.xlane.xlu0 %1073  ;;  %v1088_v51 = vpop.permute.xlu1 %1087 }
 0x3aa   :  { %1641 = vpow2.f32 %v1039_v35  ;;  %v1075_v37 = vsub.f32 %v1071_v0, %v2145_v12  ;;  %vm1089_vm4 = vcmp.eq.s32.totalorder %v2083_v10, %v1088_v51 }
 0x3ab   :  { %1643 = vpow2.f32 %v1003_v59  ;;  %v1090_v11 = vsel %vm1089_vm4, %v2097_v40, 0.0 }
 0x3ac   :  { %v1076_v38 = vmul.f32 1.442695, %v1075_v37  ;;  %v1091_v57 = vsel %vm998_vm10, %v1090_v11, 0.0 }
 0x3ad   :  { %v2148_v39 = vpop.xlane.xlu0 %1110  ;;  %v1125_v61 = vpop.permute.xlu1 %1124 }
 0x3ae   :  { %1645 = vpow2.f32 %v1076_v38  ;;  %v1112_v43 = vsub.f32 %v1108_v62, %v2148_v39  ;;  %vm1126_vm5 = vcmp.eq.s32.totalorder %v2083_v10, %v1125_v61 }
 0x3af   :  { %v1127_v45 = vsel %vm1126_vm5, %v2097_v40, 0.0 }
 0x3b0   :  { %v1113_v44 = vmul.f32 1.442695, %v1112_v43  ;;  %v1128_v14 = vsel %vm998_vm10, %v1127_v45, 0.0 }
 0x3b1   :  { %v2151_v46 = vpop.xlane.xlu0 %1147 }
 0x3b2   :  { %1647 = vpow2.f32 %v1113_v44  ;;  %v1149_v48 = vsub.f32 %v1145_v25, %v2151_v46  ;;  %v1162_v4 = vpop.permute.xlu1 %1161 }
 0x3b3   :  { %vm1163_vm6 = vcmp.eq.s32.totalorder %v2083_v10, %v1162_v4 }
 0x3b4   :  { %v1642_v49 = vpop.eup %1641  ;;  %v1150_v27 = vmul.f32 1.442695, %v1149_v48  ;;  %v1164_v15 = vsel %vm1163_vm6, %v2097_v40, 0.0 }
 0x3b5   :  { %v1644_v50 = vpop.eup %1643  ;;  %v1041_v52 = vsel %vm2092_vm8, %v1642_v49, 0.0  ;;  %v1165_v16 = vsel %vm998_vm10, %v1164_v15, 0.0 }
 0x3b6   :  { %1649 = vpow2.f32 %v1150_v27  ;;  %v1042_v53 = vsel %vm998_vm10, %v1041_v52, 0.0  ;;  %v1005_v26 = vsel %vm995_vm9, %v1644_v50, 0.0 }
 0x3b7   :  { %1043 = vadd.xlane.f32.xlu1 %v1042_v53  ;;  %v1006_v54 = vsel %vm998_vm10, %v1005_v26, 0.0 }
 0x3b8   :  { %v1646_v56 = vpop.eup %1645  ;;  %1007 = vadd.xlane.f32.xlu0 %v1006_v54 }
 0x3b9   :  { %v1078_v58 = vsel %vm2099_vm11, %v1646_v56, 0.0  ;;  %v1051_v60 = vpop.permute.xlu0 %1050 }
 0x3ba   :  { %v1079_v42 = vsel %vm998_vm10, %v1078_v58, 0.0  ;;  %vm1052_vm3 = vcmp.eq.s32.totalorder %v2083_v10, %v1051_v60 }
 0x3bb   :  { %v1053_v3 = vsel %vm1052_vm3, %v2097_v40, 0.0 }
 0x3bc   :  { %v1648_v63 = vpop.eup %1647  ;;  %1080 = vadd.xlane.f32.xlu0 %v1079_v42  ;;  %v1054_v9 = vsel %vm998_vm10, %v1053_v3, 0.0 }
 0x3bd   :  { %v1115_v1 = vsel %vm2117_vm14, %v1648_v63, 0.0 }
 0x3be   :  { %v1116_v2 = vsel %vm998_vm10, %v1115_v1, 0.0 }
 0x3c0   :  { %v1650_v41 = vpop.eup %1649  ;;  %1117 = vadd.xlane.f32.xlu0 %v1116_v2 }
 0x3c1   :  { %v1152_v5 = vsel %vm2127_vm1, %v1650_v41, 0.0 }
 0x3c2   :  { %v1153_v6 = vsel %vm998_vm10, %v1152_v5, 0.0 }
 0x3c3   :  { %1154 = vadd.xlane.f32.xlu1 %v1153_v6 }
 0x3c4   :  { %1055 = vadd.xlane.f32.xlu0 %v1054_v9 }
 0x3c7   :  { %1092 = vadd.xlane.f32.xlu1 %v1091_v57 }
 0x3c8   :  { %1129 = vadd.xlane.f32.xlu0 %v1128_v14 }
 0x3cb   :  { %1166 = vadd.xlane.f32.xlu1 %v1165_v16 }
 0x3cc   :  { %1672 = shalt.err (!%p1669_p4)
}
 0x3cd   :  { %s1673_s16 = scalar_lea.hbm %s2227_s7, 32 }
 0x3ce   :  { %p1674_p5 = scmp.ne.s32.totalorder %s2227_s7, %s1673_s16  ;;  %p1677_p6 = scmp.lt.u32.totalorder %s1673_s16, %s2227_s7 }
 0x3d0   :  { %p1679_p7 = pnand %p1677_p6, %p1674_p5 }
 0x3d2   :  { %1682 = shalt.err (!%p1679_p7)
}
 0x3d3   :  { %1189 = dma.vmem_to_hbm [thread:$0]  %s1187_s2, 32, %s2227_s7, [#allocation3]   ;;  %vm1028_vm7 = vcmp.eq.s32.totalorder %v2083_v10, 0  ;;  %vm1065_vm8 = vcmp.eq.s32.totalorder %v2083_v10, 1  ;;  %vm1102_vm9 = vcmp.eq.s32.totalorder %v2083_v10, 2  ;;  %vm1176_vm11 = vcmp.eq.s32.totalorder %v2083_v10, 4 }
 0x3d4   :  { %s1720_s7 = smov [#allocation4]  }
 0x3d5   :  { %s1196_s23 = sshll.u32 %s1720_s7, 4  ;;  %s1197_s23 = int_to_ptr.vmem [resolvable:$true] %s1196_s23 }
 0x3d6   :  { %s1683_s24 = scalar_lea.vmem %s1197_s23, 16  ;;  %s1687_s25 = scalar_lea.vmem %s1197_s23, 32 }
 0x3d7   :  { %p1684_p8 = scmp.ne.s32.totalorder %s1197_s23, %s1683_s24  ;;  %p1688_p9 = scmp.lt.s32.totalorder %s1197_s23, %s1197_s23 }
 0x3d8   :  { %p1689_p10 = scmp.lt.s32.totalorder %s1687_s25, %s1683_s24 }
 0x3da   :  { %p1690_p11 = por %p1689_p10, %p1688_p9 }
 0x3dc   :  { %p1691_p12 = pnand %p1690_p11, %p1684_p8 }
 0x3e6   :  { %v1019_v40 = vpop.xlane.xlu0 %1018 }
 0x444   :  { %v1044_v17 = vpop.xlane.xlu1 %1043 }
 0x445   :  { %1651 = vlog2.f32 %v1044_v17  ;;  %v1008_v55 = vpop.xlane.xlu0 %1007 }
 0x446   :  { %1653 = vlog2.f32 %v1008_v55 }
 0x449   :  { %v1081_v18 = vpop.xlane.xlu0 %1080 }
 0x44a   :  { %1655 = vlog2.f32 %v1081_v18 }
 0x44d   :  { %v1118_v0 = vpop.xlane.xlu0 %1117 }
 0x44e   :  { %1657 = vlog2.f32 %v1118_v0 }
 0x44f   :  { %v1652_v19 = vpop.eup %1651 }
 0x450   :  { %v1654_v20 = vpop.eup %1653  ;;  %v1046_v62 = vmul.f32 0.6931472, %v1652_v19  ;;  %v1155_v23 = vpop.xlane.xlu1 %1154 }
 0x451   :  { %v1010_v24 = vmul.f32 0.6931472, %v1654_v20  ;;  %1659 = vlog2.f32 %v1155_v23  ;;  %v1056_v28 = vpop.xlane.xlu0 %1055 }
 0x452   :  { %v1047_v25 = vadd.f32 %v1046_v62, %v2139_v22 }
 0x453   :  { %v1011_v8 = vadd.f32 %v1010_v24, %v2141_v21 }
 0x454   :  { %v1656_v29 = vpop.eup %1655  ;;  %v1057_v30 = vsub.f32 %v1047_v25, %v1056_v28  ;;  %v1093_v35 = vpop.xlane.xlu1 %1092 }
 0x455   :  { %v1020_v31 = vsub.f32 %v1011_v8, %v1019_v40  ;;  %v1083_v7 = vmul.f32 0.6931472, %v1656_v29  ;;  %v1130_v51 = vpop.xlane.xlu0 %1129 }
 0x456   :  { %v1058_v32 = vsel %vm998_vm10, %v1057_v30, 0.0 }
 0x457   :  { %v1021_v13 = vsel %vm998_vm10, %v1020_v31, 0.0  ;;  %v1059_v33 = vrot.slane %v1058_v32, 4  ;;  %v1084_v47 = vadd.f32 %v1083_v7, %v2145_v12 }
 0x458   :  { %v1658_v34 = vpop.eup %1657  ;;  %v1022_v36 = vrot.slane %v1021_v13, 4  ;;  %v1167_v60 = vpop.xlane.xlu1 %1166 }
 0x459   :  { %v1120_v59 = vmul.f32 0.6931472, %v1658_v34  ;;  %v1060_v37 = vadd.f32 %v1059_v33, %v1058_v32  ;;  %v1094_v22 = vsub.f32 %v1084_v47, %v1093_v35 }
 0x45a   :  { %v1023_v38 = vadd.f32 %v1022_v36, %v1021_v13 }
 0x45b   :  { %v1660_v21 = vpop.eup %1659  ;;  %v1061_v43 = vrot.slane %v1060_v37, 2  ;;  %v1095_v44 = vsel %vm998_vm10, %v1094_v22, 0.0  ;;  %v1121_v48 = vadd.f32 %v1120_v59, %v2148_v39 }
 0x45c   :  { %v1024_v49 = vrot.slane %v1023_v38, 2  ;;  %v1157_v27 = vmul.f32 0.6931472, %v1660_v21  ;;  %v1096_v50 = vrot.slane %v1095_v44, 4 }
 0x45d   :  { %v1062_v52 = vadd.f32 %v1061_v43, %v1060_v37  ;;  %v1131_v53 = vsub.f32 %v1121_v48, %v1130_v51 }
 0x45e   :  { %v1025_v12 = vadd.f32 %v1024_v49, %v1023_v38  ;;  %v1097_v26 = vadd.f32 %v1096_v50, %v1095_v44  ;;  %v1158_v54 = vadd.f32 %v1157_v27, %v2151_v46 }
 0x45f   :  { %v1063_v56 = vrot.slane %v1062_v52, 1  ;;  %v1132_v58 = vsel %vm998_vm10, %v1131_v53, 0.0 }
 0x460   :  { %v1098_v42 = vrot.slane %v1097_v26, 2  ;;  %v1133_v61 = vrot.slane %v1132_v58, 4  ;;  %v1168_v63 = vsub.f32 %v1158_v54, %v1167_v60  ;;  %v1026_v1 = vrot.slane %v1025_v12, 1 }
 0x461   :  { %v1064_v3 = vadd.f32 %v1063_v56, %v1062_v52 }
 0x462   :  { %v1099_v2 = vadd.f32 %v1098_v42, %v1097_v26  ;;  %v1134_v39 = vadd.f32 %v1133_v61, %v1132_v58  ;;  %v1169_v41 = vsel %vm998_vm10, %v1168_v63, 0.0  ;;  %v1027_v5 = vadd.f32 %v1026_v1, %v1025_v12 }
 0x463   :  { %v1170_v4 = vrot.slane %v1169_v41, 4  ;;  %v1066_v15 = vsel %vm1065_vm8, %v1064_v3, 0.0  ;;  %vm1139_vm10 = vcmp.eq.s32.totalorder %v2083_v10, 3 }
 0x464   :  { %v1100_v6 = vrot.slane %v1099_v2, 1  ;;  %v1135_v9 = vrot.slane %v1134_v39, 2  ;;  %v1029_v14 = vsel %vm1028_vm7, %v1027_v5, 0.0 }
 0x465   :  { %v1171_v46 = vadd.f32 %v1170_v4, %v1169_v41  ;;  %v1067_v55 = vadd.f32 %v1066_v15, %v1029_v14 }
 0x466   :  { %v1101_v11 = vadd.f32 %v1100_v6, %v1099_v2  ;;  %v1136_v45 = vadd.f32 %v1135_v9, %v1134_v39 }
 0x467   :  { %v1172_v57 = vrot.slane %v1171_v46, 2 }
 0x468   :  { %v1137_v16 = vrot.slane %v1136_v45, 1  ;;  %v1103_v17 = vsel %vm1102_vm9, %v1101_v11, 0.0 }
 0x469   :  { %v1173_v40 = vadd.f32 %v1172_v57, %v1171_v46  ;;  %v1104_v19 = vadd.f32 %v1103_v17, %v1067_v55 }
 0x46a   :  { %v1138_v18 = vadd.f32 %v1137_v16, %v1136_v45 }
 0x46b   :  { %v1174_v0 = vrot.slane %v1173_v40, 1 }
 0x46c   :  { %v1140_v20 = vsel %vm1139_vm10, %v1138_v18, 0.0 }
 0x46d   :  { %v1175_v62 = vadd.f32 %v1174_v0, %v1173_v40  ;;  %v1141_v23 = vadd.f32 %v1140_v20, %v1104_v19 }
 0x46f   :  { %v1177_v24 = vsel %vm1176_vm11, %v1175_v62, 0.0 }
 0x470   :  { %v1178_v25 = vadd.f32 %v1177_v24, %v1141_v23 }
 0x472   :  { %1179 = vst [vmem:[#allocation4] sm:$0x1] %v1178_v25 }
 0x473   :  { %1694 = shalt.err (!%p1691_p12)
}
 0x474   :  { %s1695_s0 = scalar_lea.hbm %s2228_s8, 16 }
 0x475   :  { %p1696_p13 = scmp.ne.s32.totalorder %s2228_s8, %s1695_s0  ;;  %p1699_p0 = scmp.lt.u32.totalorder %s1695_s0, %s2228_s8 }
 0x477   :  { %p1701_p1 = pnand %p1699_p0, %p1696_p13 }
 0x479   :  { %1704 = shalt.err (!%p1701_p1)
}
 0x47a   :  { %1199 = dma.vmem_to_hbm [thread:$0]  %s1197_s23, 16, %s2228_s8, [#allocation5]  }
 0x47b   :  { %1705 = dma.done.wait [#allocation3], 32  }
 0x47c   :  { %1706 = vsyncadd [#allocation3], 4294967264 }
 0x47d   :  { %1707 = dma.done.wait [#allocation5], 16  }
 0x47e   :  { %1708 = vsyncadd [#allocation5], 4294967280 }
 0x47f   :  { %1206 = vsyncpa [#allocation3], 1 }
 0x480   :  { %1207 = vsyncpa [#allocation5], 1 }

</bundles_post_ra>
